<compile_context>
chip_gen: v7x
topology: tpu7x:2x2x1
jax: 0.10.0
libtpu: 0.0.40
codegen_flags: <defaults>
</compile_context>

<pallas_src>
import math

import jax
import jax.numpy as jnp
from jax.experimental import pallas as pl
from jax.experimental.pallas import tpu as pltpu


def _round_up(n, m):
    return ((n + m - 1) // m) * m


# ----------------------------------------------------------------------------
# Pallas kernel
# ----------------------------------------------------------------------------
def _make_kernel(num_layers, kernel_sizes, Bt, L, Dp, Hp, H, halo_lead, Lh,
                 scale, eps=1e-5):
    M = Bt * L

    def kernel(x_ref, wfc_ref, bfc_ref, *rest):
        # rest = [w_0, b_0, ..., w_{n-1}, b_{n-1}, gamma, beta, out_ref, hpad]
        w_refs = [rest[2 * i + 0] for i in range(num_layers)]
        b_refs = [rest[2 * i + 1] for i in range(num_layers)]
        gamma_ref = rest[2 * num_layers + 0]
        beta_ref = rest[2 * num_layers + 1]
        out_ref = rest[2 * num_layers + 2]
        hpad = rest[2 * num_layers + 3]   # VMEM (Bt, Lh, Hp) bf16 halo scratch

        # Zero only the halo rows; the centre [halo_lead, halo_lead+L) is
        # fully overwritten every layer, so the halo stays zero.
        if halo_lead > 0:
            hpad[:, :halo_lead, :] = jnp.zeros((Bt, halo_lead, Hp),
                                               jnp.bfloat16)
        if Lh > halo_lead + L:
            tail = Lh - (halo_lead + L)
            hpad[:, halo_lead + L:, :] = jnp.zeros((Bt, tail, Hp),
                                                   jnp.bfloat16)

        # input_to_hidden_fc : (Bt*L, Dp) @ (Dp, Hp), bf16 operands, f32 acc.
        x = x_ref[...].reshape(M, Dp)               # bf16 (cast wrapper-side)
        h = jnp.dot(x, wfc_ref[...],
                    preferred_element_type=jnp.float32) + bfc_ref[...]

        # conv stack
        for i in range(num_layers):
            K = kernel_sizes[i]
            pad = (K - 1) // 2
            # stage a bf16 copy of the hidden state in the halo buffer
            # (aligned centre store; halo rows stay zero).
            hpad[:, halo_lead:halo_lead + L, :] = (
                h.reshape(Bt, L, Hp).astype(jnp.bfloat16))
            # im2col: K shifted (Bt, L, Hp) bf16 views concatenated on the
            # lane axis (shifts come from the zero halo -> no pad math).
            taps = [hpad[:, halo_lead - pad + t:halo_lead - pad + t + L, :]
                    for t in range(K)]
            col = jnp.concatenate(taps, axis=-1).reshape(M, K * Hp)
            # One MXU matmul covers both GLU halves; the split point Hp is a
            # multiple of 128, so the lane slices below are free.
            y = jnp.dot(col, w_refs[i][...],
                        preferred_element_type=jnp.float32) + b_refs[i][...]
            a = y[:, :Hp]
            g = y[:, Hp:]
            # GLU + residual (residual scale = sqrt(scaling_factor))
            h = a * jax.nn.sigmoid(g) + h * jnp.float32(scale)

        # LayerNorm over the real H features.  Padded lanes of h are exactly
        # zero, so sums over Hp lanes equal sums over the real H lanes.
        inv_h = jnp.float32(1.0 / H)
        mean = jnp.sum(h, axis=-1, keepdims=True) * inv_h
        var = jnp.sum(h * h, axis=-1, keepdims=True) * inv_h - mean * mean
        normed = (h - mean) * jax.lax.rsqrt(var + jnp.float32(eps))
        out = normed * gamma_ref[...] + beta_ref[...]   # pad lanes -> 0
        out_ref[...] = out.reshape(Bt, L, Hp).astype(out_ref.dtype)

    return kernel


# ----------------------------------------------------------------------------
# Wrapper: padding, weight packing, BlockSpecs
# ----------------------------------------------------------------------------
def _pick_batch_tile(B, L):
    """Sequences per grid step: fill the MXU M-dimension (Bt*L rows) while
    keeping >= 2 grid steps when possible (v7x has two TensorCores)."""
    if L % 16 != 0:
        return 1           # keep leading-dim reshapes layout-preserving
    divisors = [d for d in range(1, B + 1) if B % d == 0]
    target = max(1, 512 // max(L, 1))
    bt = max([d for d in divisors if d <= target] or [1])
    if B // bt < 2:        # try to expose >= 2 parallel grid steps
        smaller = ([d for d in divisors if d < bt and d * L >= 128]
                   or [d for d in divisors if d < bt])
        if smaller:
            bt = max(smaller)
    return bt


def _pad2(a, rows, cols, dtype=None):
    out = jnp.zeros((rows, cols), a.dtype).at[:a.shape[0], :a.shape[1]].set(a)
    return out if dtype is None else out.astype(dtype)


def _pack_params(params, Dp, Hp):
    f32, bf16 = jnp.float32, jnp.bfloat16
    D, H = params["wfc"].shape
    packed = {
        "wfc": _pad2(params["wfc"], Dp, Hp, bf16),
        "bfc": _pad2(params["bfc"], 1, Hp),
        "gamma": _pad2(params["gamma"], 1, Hp),
        "beta": _pad2(params["beta"], 1, Hp),
        "w": [], "b": [],
    }
    for w, b in zip(params["conv_w"], params["conv_b"]):
        # w: (K, cin=H, cout=2H) per-tap.  GLU 'a' half -> output lanes
        # [0, Hp), 'g' half -> [Hp, 2Hp).  Zero-pad the input channels to Hp
        # and stack the K taps -> one (K*Hp, 2*Hp) im2col weight per layer.
        K = w.shape[0]
        wp = jnp.zeros((K, Hp, 2 * Hp), f32)
        wp = wp.at[:, :H, :H].set(w[:, :, :H])
        wp = wp.at[:, :H, Hp:Hp + H].set(w[:, :, H:])
        packed["w"].append(wp.reshape(K * Hp, 2 * Hp).astype(bf16))
        bp = jnp.zeros((1, 2 * Hp), f32)
        bp = bp.at[:, :H].set(b[:, :H])
        bp = bp.at[:, Hp:Hp + H].set(b[:, H:])
        packed["b"].append(bp)
    return packed


def conv_sequence_encoder(x, params, kernel_sizes, scaling_factor,
                          batch_tile=None):
    """x: (B, L, D) float32. Returns (B, L, H) float32."""
    B, L, D = x.shape
    D2, H = params["wfc"].shape
    assert D2 == D
    num_layers = len(params["conv_w"])
    assert len(kernel_sizes) == num_layers
    assert all(k % 2 == 1 for k in kernel_sizes), "kernel sizes must be odd"
    for w, k in zip(params["conv_w"], kernel_sizes):
        assert w.shape == (k, H, 2 * H), "residual needs equal hidden dims"

    Dp = _round_up(D, 128)
    Hp = _round_up(H, 128)
    Bt = batch_tile if batch_tile is not None else _pick_batch_tile(B, L)
    assert B % Bt == 0

    Kmax = max(kernel_sizes)
    pad_max = (Kmax - 1) // 2
    halo_lead = _round_up(pad_max, 8) if pad_max > 0 else 0  # aligned centre
    Lh = halo_lead + (_round_up(L + pad_max, 8) if pad_max > 0 else L)

    scale = math.sqrt(float(scaling_factor))

    # pad features to lane width; cast the MXU-bound input to bf16 up front
    xp = jnp.zeros((B, L, Dp), jnp.float32).at[:, :, :D].set(x)
    xp = xp.astype(jnp.bfloat16)
    packed = _pack_params(params, Dp, Hp)

    kernel = _make_kernel(num_layers, tuple(int(k) for k in kernel_sizes),
                          Bt, L, Dp, Hp, H, halo_lead, Lh, scale)

    def _const(a):
        # resident weight / parameter block: same block every grid step
        return pl.BlockSpec(a.shape, lambda b: (0,) * a.ndim)

    inputs = [xp, packed["wfc"], packed["bfc"]]
    in_specs = [pl.BlockSpec((Bt, L, Dp), lambda b: (b, 0, 0)),
                _const(packed["wfc"]), _const(packed["bfc"])]
    for i in range(num_layers):
        for name in ("w", "b"):
            arr = packed[name][i]
            inputs.append(arr)
            in_specs.append(_const(arr))
    inputs += [packed["gamma"], packed["beta"]]
    in_specs += [_const(packed["gamma"]), _const(packed["beta"])]

    out = pl.pallas_call(
        kernel,
        out_shape=jax.ShapeDtypeStruct((B, L, Hp), jnp.float32),
        grid_spec=pltpu.PrefetchScalarGridSpec(
            num_scalar_prefetch=0,
            grid=(B // Bt,),
            in_specs=in_specs,
            out_specs=pl.BlockSpec((Bt, L, Hp), lambda b: (b, 0, 0)),
            scratch_shapes=[pltpu.VMEM((Bt, Lh, Hp), jnp.bfloat16)],
        ),
        compiler_params=pltpu.CompilerParams(
            dimension_semantics=("parallel",),
            vmem_limit_bytes=64 * 1024 * 1024,
        ),
    )(*inputs)
    return out[:, :, :H]


# ----------------------------------------------------------------------------
# Pure-JAX reference (mirrors the kernel's precision: bf16 MXU operands,
# f32 accumulation and f32 elementwise math) — validation only.
# ----------------------------------------------------------------------------
def reference_forward(x, params, kernel_sizes, scaling_factor):
    f32, bf16 = jnp.float32, jnp.bfloat16
    B, L, D = x.shape
    H = params["wfc"].shape[1]
    scale = f32(math.sqrt(float(scaling_factor)))
    h = jnp.einsum("bld,dh->blh", x.astype(bf16), params["wfc"].astype(bf16),
                   preferred_element_type=f32) + params["bfc"]
    for w, bb, K in zip(params["conv_w"], params["conv_b"], kernel_sizes):
        pad = (K - 1) // 2
        hb = h.astype(bf16)
        hb_pad = jnp.pad(hb, ((0, 0), (pad, pad), (0, 0)))
        y = jnp.zeros((B, L, 2 * H), f32) + bb
        for t in range(K):
            y = y + jnp.einsum("blh,ho->blo", hb_pad[:, t:t + L, :],
                               w[t].astype(bf16), preferred_element_type=f32)
        a, g = y[..., :H], y[..., H:]
        h = a * jax.nn.sigmoid(g) + h * scale
    mean = jnp.mean(h, axis=-1, keepdims=True)
    var = jnp.mean((h - mean) ** 2, axis=-1, keepdims=True)
    return ((h - mean) * jax.lax.rsqrt(var + f32(1e-5))
            * params["gamma"] + params["beta"])


# ----------------------------------------------------------------------------
# Deterministic parameter init (mimics the module's __init__ shapes)
# ----------------------------------------------------------------------------
def init_params(key, input_dim, hidden_dims, conv_kernel_sizes):
    keys = jax.random.split(key, 2 + 2 * (len(hidden_dims) - 1) + 2)
    H0 = hidden_dims[0]
    ki = iter(keys)

    # nn.Linear(input_dim, hidden_dims[0]); stored transposed as (D, H0)
    bound = 1.0 / math.sqrt(input_dim)
    wfc = jax.random.uniform(next(ki), (input_dim, H0), jnp.float32, -bound, bound)
    bfc = jax.random.uniform(next(ki), (1, H0), jnp.float32, -bound, bound)

    conv_w, conv_b = [], []
    for i in range(len(hidden_dims) - 1):
        cin, cout = hidden_dims[i], 2 * hidden_dims[i + 1]
        K = conv_kernel_sizes[i]
        bound = 1.0 / math.sqrt(cin * K)
        # PyTorch Conv1d weight is (cout, cin, K); stored per-tap as (K, cin, cout)
        w = jax.random.uniform(next(ki), (K, cin, cout), jnp.float32, -bound, bound)
        b = jax.random.uniform(next(ki), (1, cout), jnp.float32, -bound, bound)
        conv_w.append(w)
        conv_b.append(b)

    gamma = jnp.ones((1, hidden_dims[-1]), jnp.float32)
    beta = jnp.zeros((1, hidden_dims[-1]), jnp.float32)
    return dict(wfc=wfc, bfc=bfc, conv_w=conv_w, conv_b=conv_b,
                gamma=gamma, beta=beta)


# ----------------------------------------------------------------------------
if __name__ == "__main__":
    key = jax.random.PRNGKey(0)

    # Small config consistent with the module
    B, L = 4, 32
    input_dim = 32
    hidden_dims = [32, 32, 32]          # residual requires equal hidden dims
    conv_kernel_sizes = [3, 5]          # must be odd
    scaling_factor = 0.5
    dropout_rate = 0.0                  # eval-mode / identity

    kx, kp = jax.random.split(key)
    x = jax.random.normal(kx, (B, L, input_dim), jnp.float32)
    params = init_params(kp, input_dim, hidden_dims, conv_kernel_sizes)

    out = jax.block_until_ready(
        conv_sequence_encoder(x, params, conv_kernel_sizes, scaling_factor))
    ref = jax.block_until_ready(
        reference_forward(x, params, conv_kernel_sizes, scaling_factor))

    assert out.shape == (B, L, hidden_dims[-1])
    assert jnp.allclose(out, ref, atol=2e-3, rtol=2e-3), (
        "mismatch vs JAX reference: max abs diff = "
        f"{float(jnp.max(jnp.abs(out - ref)))}")

    print("KERNEL_OK")
</pallas_src>

<mosaic_0001>
module attributes {stable_mosaic.version = 11 : i64} {
  func.func @kernel(%arg0: i32, %arg1: memref<2x32x128xbf16, #tpu.memory_space<vmem>>, %arg2: memref<128x128xbf16, #tpu.memory_space<vmem>>, %arg3: memref<1x128xf32, #tpu.memory_space<vmem>>, %arg4: memref<384x256xbf16, #tpu.memory_space<vmem>>, %arg5: memref<1x256xf32, #tpu.memory_space<vmem>>, %arg6: memref<640x256xbf16, #tpu.memory_space<vmem>>, %arg7: memref<1x256xf32, #tpu.memory_space<vmem>>, %arg8: memref<1x128xf32, #tpu.memory_space<vmem>>, %arg9: memref<1x128xf32, #tpu.memory_space<vmem>>, %arg10: memref<2x32x128xf32, #tpu.memory_space<vmem>>, %arg11: memref<2x48x128xbf16, #tpu.memory_space<vmem>>) attributes {dimension_semantics = [#tpu.dimension_semantics<parallel>], iteration_bounds = array<i64: 2>, scalar_prefetch = 0 : i64, scratch_operands = 1 : i64, tpu.core_type = #tpu.core_type<tc>, window_params = [{transform_indices = @transform_0, window_bounds = array<i64: 2, 32, 128>}, {pipeline_mode = #tpu.pipeline_mode<synchronous>, transform_indices = @transform_1, window_bounds = array<i64: 128, 128>}, {pipeline_mode = #tpu.pipeline_mode<synchronous>, transform_indices = @transform_2, window_bounds = array<i64: 1, 128>}, {pipeline_mode = #tpu.pipeline_mode<synchronous>, transform_indices = @transform_3, window_bounds = array<i64: 384, 256>}, {pipeline_mode = #tpu.pipeline_mode<synchronous>, transform_indices = @transform_4, window_bounds = array<i64: 1, 256>}, {pipeline_mode = #tpu.pipeline_mode<synchronous>, transform_indices = @transform_5, window_bounds = array<i64: 640, 256>}, {pipeline_mode = #tpu.pipeline_mode<synchronous>, transform_indices = @transform_6, window_bounds = array<i64: 1, 256>}, {pipeline_mode = #tpu.pipeline_mode<synchronous>, transform_indices = @transform_7, window_bounds = array<i64: 1, 128>}, {pipeline_mode = #tpu.pipeline_mode<synchronous>, transform_indices = @transform_8, window_bounds = array<i64: 1, 128>}, {transform_indices = @transform_9, window_bounds = array<i64: 2, 32, 128>}]} {
    %cst = arith.constant 0.000000e+00 : bf16
    %0 = vector.broadcast %cst : bf16 to vector<2x8x128xbf16>
    %c0 = arith.constant 0 : index
    %c0_0 = arith.constant 0 : index
    %c0_1 = arith.constant 0 : index
    %1 = vector.load %arg11[%c0, %c0_0, %c0_1] : memref<2x48x128xbf16, #tpu.memory_space<vmem>>, vector<2x8x128xbf16>
    tpu.vector_store %arg11[%c0, %c0_0, %c0_1], %0 {strides = array<i32>} : memref<2x48x128xbf16, #tpu.memory_space<vmem>>, vector<2x8x128xbf16>,
    %cst_2 = arith.constant 0.000000e+00 : bf16
    %2 = vector.broadcast %cst_2 : bf16 to vector<2x8x128xbf16>
    %c0_3 = arith.constant 0 : index
    %c40 = arith.constant 40 : index
    %c0_4 = arith.constant 0 : index
    %3 = vector.load %arg11[%c0_3, %c40, %c0_4] : memref<2x48x128xbf16, #tpu.memory_space<vmem>>, vector<2x8x128xbf16>
    tpu.vector_store %arg11[%c0_3, %c40, %c0_4], %2 {strides = array<i32>} : memref<2x48x128xbf16, #tpu.memory_space<vmem>>, vector<2x8x128xbf16>,
    %c0_5 = arith.constant 0 : index
    %c0_6 = arith.constant 0 : index
    %c0_7 = arith.constant 0 : index
    %4 = vector.load %arg1[%c0_5, %c0_6, %c0_7] : memref<2x32x128xbf16, #tpu.memory_space<vmem>>, vector<2x32x128xbf16>
    %5 = vector.shape_cast %4 : vector<2x32x128xbf16> to vector<64x128xbf16>
    %c0_8 = arith.constant 0 : index
    %c0_9 = arith.constant 0 : index
    %6 = vector.load %arg2[%c0_8, %c0_9] : memref<128x128xbf16, #tpu.memory_space<vmem>>, vector<128x128xbf16>
    %cst_10 = arith.constant dense<0.000000e+00> : vector<64x128xf32>
    %7 = tpu.matmul %5, %6, %cst_10 {dimension_numbers = #tpu.dot_dimension_numbers<[1], [0], [0], [1], [0, 0, 1, 1], [], []>} : vector<64x128xbf16>, vector<128x128xbf16>, vector<64x128xf32> -> vector<64x128xf32>
    %c0_11 = arith.constant 0 : index
    %c0_12 = arith.constant 0 : index
    %8 = vector.load %arg3[%c0_11, %c0_12] : memref<1x128xf32, #tpu.memory_space<vmem>>, vector<1x128xf32>
    %9 = vector.broadcast %8 : vector<1x128xf32> to vector<64x128xf32>
    %10 = arith.addf %7, %9 : vector<64x128xf32>
    %11 = vector.shape_cast %10 : vector<64x128xf32> to vector<2x32x128xf32>
    %12 = arith.truncf %11 : vector<2x32x128xf32> to vector<2x32x128xbf16>
    %c0_13 = arith.constant 0 : index
    %c8 = arith.constant 8 : index
    %c0_14 = arith.constant 0 : index
    %13 = vector.load %arg11[%c0_13, %c8, %c0_14] : memref<2x48x128xbf16, #tpu.memory_space<vmem>>, vector<2x32x128xbf16>
    tpu.vector_store %arg11[%c0_13, %c8, %c0_14], %12 {strides = array<i32>} : memref<2x48x128xbf16, #tpu.memory_space<vmem>>, vector<2x32x128xbf16>,
    %c0_15 = arith.constant 0 : index
    %c7 = arith.constant 7 : index
    %c0_16 = arith.constant 0 : index
    %14 = vector.load %arg11[%c0_15, %c7, %c0_16] : memref<2x48x128xbf16, #tpu.memory_space<vmem>>, vector<2x32x128xbf16>
    %c0_17 = arith.constant 0 : index
    %c8_18 = arith.constant 8 : index
    %c0_19 = arith.constant 0 : index
    %15 = vector.load %arg11[%c0_17, %c8_18, %c0_19] : memref<2x48x128xbf16, #tpu.memory_space<vmem>>, vector<2x32x128xbf16>
    %c0_20 = arith.constant 0 : index
    %c9 = arith.constant 9 : index
    %c0_21 = arith.constant 0 : index
    %16 = vector.load %arg11[%c0_20, %c9, %c0_21] : memref<2x48x128xbf16, #tpu.memory_space<vmem>>, vector<2x32x128xbf16>
    %17 = tpu.concatenate %14, %15, %16 in 2 : vector<2x32x128xbf16>, vector<2x32x128xbf16>, vector<2x32x128xbf16> -> vector<2x32x384xbf16>
    %18 = vector.shape_cast %17 : vector<2x32x384xbf16> to vector<64x384xbf16>
    %c0_22 = arith.constant 0 : index
    %c0_23 = arith.constant 0 : index
    %19 = vector.load %arg4[%c0_22, %c0_23] : memref<384x256xbf16, #tpu.memory_space<vmem>>, vector<384x256xbf16>
    %cst_24 = arith.constant dense<0.000000e+00> : vector<64x256xf32>
    %20 = tpu.matmul %18, %19, %cst_24 {dimension_numbers = #tpu.dot_dimension_numbers<[1], [0], [0], [1], [0, 0, 1, 1], [], []>} : vector<64x384xbf16>, vector<384x256xbf16>, vector<64x256xf32> -> vector<64x256xf32>
    %c0_25 = arith.constant 0 : index
    %c0_26 = arith.constant 0 : index
    %21 = vector.load %arg5[%c0_25, %c0_26] : memref<1x256xf32, #tpu.memory_space<vmem>>, vector<1x256xf32>
    %22 = vector.broadcast %21 : vector<1x256xf32> to vector<64x256xf32>
    %23 = arith.addf %20, %22 : vector<64x256xf32>
    %24 = vector.extract_strided_slice %23 {offsets = [0, 0], sizes = [64, 128], strides = [1, 1]} : vector<64x256xf32> to vector<64x128xf32>
    %25 = vector.extract_strided_slice %23 {offsets = [0, 128], sizes = [64, 128], strides = [1, 1]} : vector<64x256xf32> to vector<64x128xf32>
    %26 = arith.negf %25 : vector<64x128xf32>
    %27 = math.exp %26 : vector<64x128xf32>
    %cst_27 = arith.constant 1.000000e+00 : f32
    %28 = vector.broadcast %cst_27 : f32 to vector<64x128xf32>
    %29 = arith.addf %28, %27 : vector<64x128xf32>
    %30 = arith.divf %28, %29 : vector<64x128xf32>
    %31 = arith.mulf %24, %30 : vector<64x128xf32>
    %cst_28 = arith.constant 0.707106769 : f32
    %32 = vector.broadcast %cst_28 : f32 to vector<64x128xf32>
    %33 = arith.mulf %10, %32 : vector<64x128xf32>
    %34 = arith.addf %31, %33 : vector<64x128xf32>
    %35 = vector.shape_cast %34 : vector<64x128xf32> to vector<2x32x128xf32>
    %36 = arith.truncf %35 : vector<2x32x128xf32> to vector<2x32x128xbf16>
    %c0_29 = arith.constant 0 : index
    %c8_30 = arith.constant 8 : index
    %c0_31 = arith.constant 0 : index
    %37 = vector.load %arg11[%c0_29, %c8_30, %c0_31] : memref<2x48x128xbf16, #tpu.memory_space<vmem>>, vector<2x32x128xbf16>
    tpu.vector_store %arg11[%c0_29, %c8_30, %c0_31], %36 {strides = array<i32>} : memref<2x48x128xbf16, #tpu.memory_space<vmem>>, vector<2x32x128xbf16>,
    %c0_32 = arith.constant 0 : index
    %c6 = arith.constant 6 : index
    %c0_33 = arith.constant 0 : index
    %38 = vector.load %arg11[%c0_32, %c6, %c0_33] : memref<2x48x128xbf16, #tpu.memory_space<vmem>>, vector<2x32x128xbf16>
    %c0_34 = arith.constant 0 : index
    %c7_35 = arith.constant 7 : index
    %c0_36 = arith.constant 0 : index
    %39 = vector.load %arg11[%c0_34, %c7_35, %c0_36] : memref<2x48x128xbf16, #tpu.memory_space<vmem>>, vector<2x32x128xbf16>
    %c0_37 = arith.constant 0 : index
    %c8_38 = arith.constant 8 : index
    %c0_39 = arith.constant 0 : index
    %40 = vector.load %arg11[%c0_37, %c8_38, %c0_39] : memref<2x48x128xbf16, #tpu.memory_space<vmem>>, vector<2x32x128xbf16>
    %c0_40 = arith.constant 0 : index
    %c9_41 = arith.constant 9 : index
    %c0_42 = arith.constant 0 : index
    %41 = vector.load %arg11[%c0_40, %c9_41, %c0_42] : memref<2x48x128xbf16, #tpu.memory_space<vmem>>, vector<2x32x128xbf16>
    %c0_43 = arith.constant 0 : index
    %c10 = arith.constant 10 : index
    %c0_44 = arith.constant 0 : index
    %42 = vector.load %arg11[%c0_43, %c10, %c0_44] : memref<2x48x128xbf16, #tpu.memory_space<vmem>>, vector<2x32x128xbf16>
    %43 = tpu.concatenate %38, %39, %40, %41, %42 in 2 : vector<2x32x128xbf16>, vector<2x32x128xbf16>, vector<2x32x128xbf16>, vector<2x32x128xbf16>, vector<2x32x128xbf16> -> vector<2x32x640xbf16>
    %44 = vector.shape_cast %43 : vector<2x32x640xbf16> to vector<64x640xbf16>
    %c0_45 = arith.constant 0 : index
    %c0_46 = arith.constant 0 : index
    %45 = vector.load %arg6[%c0_45, %c0_46] : memref<640x256xbf16, #tpu.memory_space<vmem>>, vector<640x256xbf16>
    %cst_47 = arith.constant dense<0.000000e+00> : vector<64x256xf32>
    %46 = tpu.matmul %44, %45, %cst_47 {dimension_numbers = #tpu.dot_dimension_numbers<[1], [0], [0], [1], [0, 0, 1, 1], [], []>} : vector<64x640xbf16>, vector<640x256xbf16>, vector<64x256xf32> -> vector<64x256xf32>
    %c0_48 = arith.constant 0 : index
    %c0_49 = arith.constant 0 : index
    %47 = vector.load %arg7[%c0_48, %c0_49] : memref<1x256xf32, #tpu.memory_space<vmem>>, vector<1x256xf32>
    %48 = vector.broadcast %47 : vector<1x256xf32> to vector<64x256xf32>
    %49 = arith.addf %46, %48 : vector<64x256xf32>
    %50 = vector.extract_strided_slice %49 {offsets = [0, 0], sizes = [64, 128], strides = [1, 1]} : vector<64x256xf32> to vector<64x128xf32>
    %51 = vector.extract_strided_slice %49 {offsets = [0, 128], sizes = [64, 128], strides = [1, 1]} : vector<64x256xf32> to vector<64x128xf32>
    %52 = arith.negf %51 : vector<64x128xf32>
    %53 = math.exp %52 : vector<64x128xf32>
    %cst_50 = arith.constant 1.000000e+00 : f32
    %54 = vector.broadcast %cst_50 : f32 to vector<64x128xf32>
    %55 = arith.addf %54, %53 : vector<64x128xf32>
    %56 = arith.divf %54, %55 : vector<64x128xf32>
    %57 = arith.mulf %50, %56 : vector<64x128xf32>
    %cst_51 = arith.constant 0.707106769 : f32
    %58 = vector.broadcast %cst_51 : f32 to vector<64x128xf32>
    %59 = arith.mulf %34, %58 : vector<64x128xf32>
    %60 = arith.addf %57, %59 : vector<64x128xf32>
    %cst_52 = arith.constant dense<0.000000e+00> : vector<64xf32>
    %61 = vector.multi_reduction <add>, %60, %cst_52 [1] : vector<64x128xf32> to vector<64xf32>
    %62 = vector.shape_cast %61 : vector<64xf32> to vector<64x1xf32>
    %cst_53 = arith.constant 3.125000e-02 : f32
    %63 = vector.broadcast %cst_53 : f32 to vector<64x1xf32>
    %64 = arith.mulf %62, %63 : vector<64x1xf32>
    %65 = arith.mulf %60, %60 : vector<64x128xf32>
    %cst_54 = arith.constant dense<0.000000e+00> : vector<64xf32>
    %66 = vector.multi_reduction <add>, %65, %cst_54 [1] : vector<64x128xf32> to vector<64xf32>
    %67 = vector.shape_cast %66 : vector<64xf32> to vector<64x1xf32>
    %cst_55 = arith.constant 3.125000e-02 : f32
    %68 = vector.broadcast %cst_55 : f32 to vector<64x1xf32>
    %69 = arith.mulf %67, %68 : vector<64x1xf32>
    %70 = arith.mulf %64, %64 : vector<64x1xf32>
    %71 = arith.subf %69, %70 : vector<64x1xf32>
    %72 = vector.broadcast %64 : vector<64x1xf32> to vector<64x128xf32>
    %73 = arith.subf %60, %72 : vector<64x128xf32>
    %cst_56 = arith.constant 9.99999974E-6 : f32
    %74 = vector.broadcast %cst_56 : f32 to vector<64x1xf32>
    %75 = arith.addf %71, %74 : vector<64x1xf32>
    %76 = math.rsqrt %75 : vector<64x1xf32>
    %77 = vector.broadcast %76 : vector<64x1xf32> to vector<64x128xf32>
    %78 = arith.mulf %73, %77 : vector<64x128xf32>
    %c0_57 = arith.constant 0 : index
    %c0_58 = arith.constant 0 : index
    %79 = vector.load %arg8[%c0_57, %c0_58] : memref<1x128xf32, #tpu.memory_space<vmem>>, vector<1x128xf32>
    %80 = vector.broadcast %79 : vector<1x128xf32> to vector<64x128xf32>
    %81 = arith.mulf %78, %80 : vector<64x128xf32>
    %c0_59 = arith.constant 0 : index
    %c0_60 = arith.constant 0 : index
    %82 = vector.load %arg9[%c0_59, %c0_60] : memref<1x128xf32, #tpu.memory_space<vmem>>, vector<1x128xf32>
    %83 = vector.broadcast %82 : vector<1x128xf32> to vector<64x128xf32>
    %84 = arith.addf %81, %83 : vector<64x128xf32>
    %85 = vector.shape_cast %84 : vector<64x128xf32> to vector<2x32x128xf32>
    %c0_61 = arith.constant 0 : index
    %c0_62 = arith.constant 0 : index
    %c0_63 = arith.constant 0 : index
    %86 = vector.load %arg10[%c0_61, %c0_62, %c0_63] : memref<2x32x128xf32, #tpu.memory_space<vmem>>, vector<2x32x128xf32>
    tpu.vector_store %arg10[%c0_61, %c0_62, %c0_63], %85 {strides = array<i32>} : memref<2x32x128xf32, #tpu.memory_space<vmem>>, vector<2x32x128xf32>,
    return
  }
  func.func @transform_0(%arg0: i32) -> (i32, i32, i32) {
    %c0_i32 = arith.constant 0 : i32
    %c0_i32_0 = arith.constant 0 : i32
    %c0_i32_1 = arith.constant 0 : i32
    return %arg0, %c0_i32, %c0_i32_0 : i32, i32, i32
  }
  func.func @transform_1(%arg0: i32) -> (i32, i32) {
    %c0_i32 = arith.constant 0 : i32
    %c0_i32_0 = arith.constant 0 : i32
    %c0_i32_1 = arith.constant 0 : i32
    return %c0_i32, %c0_i32_0 : i32, i32
  }
  func.func @transform_2(%arg0: i32) -> (i32, i32) {
    %c0_i32 = arith.constant 0 : i32
    %c0_i32_0 = arith.constant 0 : i32
    %c0_i32_1 = arith.constant 0 : i32
    return %c0_i32, %c0_i32_0 : i32, i32
  }
  func.func @transform_3(%arg0: i32) -> (i32, i32) {
    %c0_i32 = arith.constant 0 : i32
    %c0_i32_0 = arith.constant 0 : i32
    %c0_i32_1 = arith.constant 0 : i32
    return %c0_i32, %c0_i32_0 : i32, i32
  }
  func.func @transform_4(%arg0: i32) -> (i32, i32) {
    %c0_i32 = arith.constant 0 : i32
    %c0_i32_0 = arith.constant 0 : i32
    %c0_i32_1 = arith.constant 0 : i32
    return %c0_i32, %c0_i32_0 : i32, i32
  }
  func.func @transform_5(%arg0: i32) -> (i32, i32) {
    %c0_i32 = arith.constant 0 : i32
    %c0_i32_0 = arith.constant 0 : i32
    %c0_i32_1 = arith.constant 0 : i32
    return %c0_i32, %c0_i32_0 : i32, i32
  }
  func.func @transform_6(%arg0: i32) -> (i32, i32) {
    %c0_i32 = arith.constant 0 : i32
    %c0_i32_0 = arith.constant 0 : i32
    %c0_i32_1 = arith.constant 0 : i32
    return %c0_i32, %c0_i32_0 : i32, i32
  }
  func.func @transform_7(%arg0: i32) -> (i32, i32) {
    %c0_i32 = arith.constant 0 : i32
    %c0_i32_0 = arith.constant 0 : i32
    %c0_i32_1 = arith.constant 0 : i32
    return %c0_i32, %c0_i32_0 : i32, i32
  }
  func.func @transform_8(%arg0: i32) -> (i32, i32) {
    %c0_i32 = arith.constant 0 : i32
    %c0_i32_0 = arith.constant 0 : i32
    %c0_i32_1 = arith.constant 0 : i32
    return %c0_i32, %c0_i32_0 : i32, i32
  }
  func.func @transform_9(%arg0: i32) -> (i32, i32, i32) {
    %c0_i32 = arith.constant 0 : i32
    %c0_i32_0 = arith.constant 0 : i32
    %c0_i32_1 = arith.constant 0 : i32
    return %arg0, %c0_i32, %c0_i32_0 : i32, i32, i32
  }
}

</mosaic_0001>

<bundles_post_ra>
// kernel: tpu_custom_call.1
= control target key start
LH: loop header
LB: loop body
LE: loop exit
PB: predicated region body
PF: predicated region fallthrough
CT: control target
= control target key end

     0   :  { %s4715_s0 = inlined_call_operand.hbm [shape: bf16[4,32,128], index: 0, kind: input, shape index: {}]   ;;  %s4716_s1 = inlined_call_operand.hbm [shape: bf16[128,128], index: 1, kind: input, shape index: {}]   ;;  %s4717_s2 = inlined_call_operand.hbm [shape: f32[1,128], index: 2, kind: input, shape index: {}]   ;;  %s4718_s3 = inlined_call_operand.hbm [shape: bf16[384,256], index: 3, kind: input, shape index: {}]   ;;  %s4719_s4 = inlined_call_operand.hbm [shape: f32[1,256], index: 4, kind: input, shape index: {}]   ;;  %s4720_s5 = inlined_call_operand.hbm [shape: bf16[640,256], index: 5, kind: input, shape index: {}]   ;;  %s4721_s6 = inlined_call_operand.hbm [shape: f32[1,256], index: 6, kind: input, shape index: {}]   ;;  %s4722_s7 = inlined_call_operand.hbm [shape: f32[1,128], index: 7, kind: input, shape index: {}]   ;;  %s4723_s8 = inlined_call_operand.hbm [shape: f32[1,128], index: 8, kind: input, shape index: {}]   ;;  %s4724_s9 = inlined_call_operand.hbm [shape: f32[4,32,128], index: 9, kind: output, shape index: {}]  }
   0x1   :  { %4742 = sst [smem:[#allocation31_spill]] %s4716_s1 }
   0x2   :  { %4743 = sst [smem:[#allocation32_spill]] %s4724_s9 }
   0x3   :  { %14 = vsyncpa [#allocation4], 0 }
   0x4   :  { %16 = vsyncpa [#allocation4 + $0x1], 0 }
   0x5   :  { %17 = vsyncpa [#allocation7], 0 }
   0x6   :  { %18 = vsyncpa [#allocation10], 0 }
   0x7   :  { %19 = vsyncpa [#allocation13], 0 }
   0x8   :  { %20 = vsyncpa [#allocation16], 0 }
   0x9   :  { %21 = vsyncpa [#allocation5], 0 }
   0xa   :  { %23 = vsyncpa [#allocation5 + $0x1], 0  ;;  %s3875_s30 = smov 0   ;;  %s3877_s10 = smov 0  }
   0xb   :  { %s3879_s11 = smov 0   ;;  %s3881_s12 = smov 0  }
   0xc LB: > { %s3808_s13 = smov [#allocation6]   ;;  %s3896_s15 = sadd.s32 4294967295, %s3806_s12   ;;  %s3806_s12 = sphi %s3881_s12, %s4790_s12   ;;  %s3802_s11 = sphi %s3879_s11, %s4789_s11   ;;  %s3798_s10 = sphi %s3877_s10, %s4788_s10   ;;  %s3794_s30 = sphi %s3875_s30, %s4787_s30  }
   0xd   : > { %s266_s14 = sshll.u32 %s3808_s13, 4  ;;  %p2726_p0 = scmp.ge.s32.totalorder %s3806_s12, 1  ;;  %s3901_s14 = int_to_ptr.vmem [resolvable:$true] %s266_s14 }
   0xe   : > { %p4727_p1 = scmp.eq.s32.totalorder %s3896_s15, 0  ;;  %p254_p2 = scmp.lt.s32.totalorder %s3806_s12, 3 }
   0xf   : > { %s3809_s17 = smov [#allocation9]   ;;  %s3810_s20 = smov [#allocation12]  }
  0x10   : > { %p3903_p3 = pnand %p2726_p0, %p254_p2  ;;  %s290_s18 = sshll.u32 %s3809_s17, 4  ;;  %s3916_s18 = int_to_ptr.vmem [resolvable:$true] %s290_s18 }
  0x11   : > { %s3918_s21 = sshll.u32 %s3810_s20, 4  ;;  %s4746_s1 = sld [smem:[#allocation31_spill]]  ;;  %s315_s21 = int_to_ptr.vmem [resolvable:$true] %s3918_s21 }
  0x12   : > { %s4744_s16 = scalar_select %p3903_p3, 1, 0 }
  0x13   : > { %p3088_p5 = pneg %p3903_p3 }
  0x15   : > { %p3912_p6 = pnand %p3088_p5, %p4727_p1 }
  0x17   : > { %s3470_s24 = scalar_lea.hbm %s4746_s1, 1024  ;;  %p3928_p8 = pneg %p3912_p6 }
  0x18   : > { %p3471_p7 = scmp.ne.s32.totalorder %s4746_s1, %s3470_s24  ;;  %p3477_p11 = scmp.lt.u32.totalorder %s3470_s24, %s4746_s1 }
  0x1a   : > { %p3473_p9 = pnand %p3928_p8, %p3471_p7 }
  0x1c   : > { %p3474_p10 = pneg %p3473_p9 }
  0x1e   : > { %p3479_p12 = pnand %p3477_p11, %p3474_p10 }
  0x20   : > { %3482 = shalt.err (!%p3479_p12)
}
  0x21   : > { %s3483_s13 = scalar_lea.vmem %s3901_s14, 1024  ;;  %p3491_p5 = scmp.lt.s32.totalorder %s3901_s14, %s3901_s14 }
  0x22   : > { %p3484_p13 = scmp.ne.s32.totalorder %s3901_s14, %s3483_s13  ;;  %p3492_p4 = scmp.lt.s32.totalorder %s3483_s13, %s3483_s13 }
  0x24   : > { %p3486_p0 = pnand %p3484_p13, %p3928_p8  ;;  %p3493_p7 = por %p3492_p4, %p3491_p5 }
  0x26   : > { %p3487_p2 = pneg %p3486_p0 }
  0x28   : > { %p3494_p9 = pnand %p3493_p7, %p3487_p2 }
  0x2a   : > { %3497 = shalt.err (!%p3494_p9)
}
  0x2b   : > { %s4726_s17 = smov 64   ;;  %s4729_s20 = smov 4  }
  0x2c   : > { %3091 = dma.hbm_to_vmem [thread:$0]  (!%p3912_p6), %s4746_s1, 1024, %s3901_s14, [#allocation7], %s4726_s17, %s4726_s17, %s4729_s20  }
  0x2d   : > { %s3498_s26 = scalar_lea.hbm %s4718_s3, 6144 }
  0x2e   : > { %p3499_p4 = scmp.ne.s32.totalorder %s4718_s3, %s3498_s26  ;;  %p3505_p12 = scmp.lt.u32.totalorder %s3498_s26, %s4718_s3 }
  0x30   : > { %p3501_p10 = pnand %p3499_p4, %p3928_p8 }
  0x32   : > { %p3502_p11 = pneg %p3501_p10 }
  0x34   : > { %p3507_p13 = pnand %p3505_p12, %p3502_p11 }
  0x36   : > { %3510 = shalt.err (!%p3507_p13)
}
  0x37   : > { %s3511_s14 = scalar_lea.vmem %s3916_s18, 6144  ;;  %p3519_p7 = scmp.lt.s32.totalorder %s3916_s18, %s3916_s18 }
  0x38   : > { %p3512_p0 = scmp.ne.s32.totalorder %s3916_s18, %s3511_s14  ;;  %p3520_p9 = scmp.lt.s32.totalorder %s3511_s14, %s3511_s14 }
  0x3a   : > { %p3514_p2 = pnand %p3512_p0, %p3928_p8  ;;  %p3521_p4 = por %p3520_p9, %p3519_p7 }
  0x3c   : > { %p3515_p5 = pneg %p3514_p2 }
  0x3e   : > { %p3522_p10 = pnand %p3521_p4, %p3515_p5 }
  0x40   : > { %3525 = shalt.err (!%p3522_p10)
}
  0x41   : > { %s3813_s22 = smov 128   ;;  %s3814_s9 = smov 8  }
  0x42   : > { %3097 = dma.hbm_to_vmem [thread:$0]  (!%p3912_p6), %s4718_s3, 6144, %s3916_s18, [#allocation10], %s3813_s22, %s3813_s22, %s3814_s9  }
  0x43   : > { %s3526_s28 = scalar_lea.hbm %s4720_s5, 10240 }
  0x44   : > { %p3527_p11 = scmp.ne.s32.totalorder %s4720_s5, %s3526_s28  ;;  %p3533_p0 = scmp.lt.u32.totalorder %s3526_s28, %s4720_s5 }
  0x46   : > { %p3529_p12 = pnand %p3527_p11, %p3928_p8 }
  0x48   : > { %p3530_p13 = pneg %p3529_p12 }
  0x4a   : > { %p3535_p2 = pnand %p3533_p0, %p3530_p13 }
  0x4c   : > { %3538 = shalt.err (!%p3535_p2)
}
  0x4d   : > { %s3539_s23 = scalar_lea.vmem %s315_s21, 10240  ;;  %p3547_p4 = scmp.lt.s32.totalorder %s315_s21, %s315_s21 }
  0x4e   : > { %p3540_p5 = scmp.ne.s32.totalorder %s315_s21, %s3539_s23  ;;  %p3548_p10 = scmp.lt.s32.totalorder %s3539_s23, %s3539_s23 }
  0x50   : > { %p3542_p7 = pnand %p3540_p5, %p3928_p8  ;;  %p3549_p1 = por %p3548_p10, %p3547_p4 }
  0x52   : > { %p3543_p9 = pneg %p3542_p7 }
  0x54   : > { %p3550_p3 = pnand %p3549_p1, %p3543_p9 }
  0x56   : > { %3553 = shalt.err (!%p3550_p3)
}
  0x57   : > { %3103 = dma.hbm_to_vmem [thread:$0]  (!%p3912_p6), %s4720_s5, 10240, %s315_s21, [#allocation13], %s3813_s22, %s3813_s22, %s3814_s9  }
  0x58   : > { %s3815_s17 = smov [#allocation15]   ;;  %s3816_s26 = smov [#allocation8]  }
  0x59   : > { %s339_s25 = sshll.u32 %s3815_s17, 4  ;;  %s280_s28 = sshll.u32 %s3816_s26, 4  ;;  %s340_s25 = int_to_ptr.vmem [resolvable:$true] %s339_s25  ;;  %s281_s28 = int_to_ptr.vmem [resolvable:$true] %s280_s28 }
  0x5a   : > { %s3554_s14 = scalar_lea.hbm %s4722_s7, 16 }
  0x5b   : > { %p3555_p1 = scmp.ne.s32.totalorder %s4722_s7, %s3554_s14  ;;  %p3561_p12 = scmp.lt.u32.totalorder %s3554_s14, %s4722_s7 }
  0x5d   : > { %p3557_p3 = pnand %p3555_p1, %p3928_p8 }
  0x5f   : > { %p3558_p11 = pneg %p3557_p3 }
  0x61   : > { %p3563_p13 = pnand %p3561_p12, %p3558_p11 }
  0x63   : > { %3566 = shalt.err (!%p3563_p13)
}
  0x64   : > { %s3567_s21 = scalar_lea.vmem %s340_s25, 16  ;;  %s3574_s22 = scalar_lea.vmem %s340_s25, 32 }
  0x65   : > { %p3568_p0 = scmp.ne.s32.totalorder %s340_s25, %s3567_s21  ;;  %p3575_p7 = scmp.lt.s32.totalorder %s340_s25, %s340_s25 }
  0x66   : > { %p3576_p9 = scmp.lt.s32.totalorder %s3574_s22, %s3567_s21 }
  0x67   : > { %p3570_p2 = pnand %p3568_p0, %p3928_p8 }
  0x68   : > { %p3577_p4 = por %p3576_p9, %p3575_p7 }
  0x69   : > { %p3571_p5 = pneg %p3570_p2 }
  0x6b   : > { %p3578_p10 = pnand %p3577_p4, %p3571_p5 }
  0x6d   : > { %3581 = shalt.err (!%p3578_p10)
}
  0x6e   : > { %3109 = dma.hbm_to_vmem [thread:$0]  (!%p3912_p6), %s4722_s7, 16, %s340_s25, [#allocation16]  }
  0x6f   : > { %s3582_s17 = scalar_lea.hbm %s4717_s2, 16 }
  0x70   : > { %p3583_p1 = scmp.ne.s32.totalorder %s4717_s2, %s3582_s17  ;;  %p3589_p12 = scmp.lt.u32.totalorder %s3582_s17, %s4717_s2 }
  0x72   : > { %p3585_p3 = pnand %p3583_p1, %p3928_p8 }
  0x74   : > { %p3586_p11 = pneg %p3585_p3 }
  0x76   : > { %p3591_p13 = pnand %p3589_p12, %p3586_p11 }
  0x78   : > { %3594 = shalt.err (!%p3591_p13)
}
  0x79   : > { %s3595_s23 = scalar_lea.vmem %s281_s28, 16  ;;  %s3602_s25 = scalar_lea.vmem %s281_s28, 32 }
  0x7a   : > { %p3596_p0 = scmp.ne.s32.totalorder %s281_s28, %s3595_s23  ;;  %p3603_p7 = scmp.lt.s32.totalorder %s281_s28, %s281_s28 }
  0x7b   : > { %p3604_p9 = scmp.lt.s32.totalorder %s3602_s25, %s3595_s23 }
  0x7c   : > { %p3598_p2 = pnand %p3596_p0, %p3928_p8 }
  0x7d   : > { %p3605_p4 = por %p3604_p9, %p3603_p7 }
  0x7e   : > { %p3599_p5 = pneg %p3598_p2 }
  0x80   : > { %p3606_p10 = pnand %p3605_p4, %p3599_p5 }
  0x82   : > { %3609 = shalt.err (!%p3606_p10)
}
  0x83   : > { %3094 = dma.hbm_to_vmem [thread:$0]  (!%p3912_p6), %s4717_s2, 16, %s281_s28, [#allocation7]  }
  0x84   : > { %s3817_s22 = smov [#allocation11]   ;;  %s3818_s9 = smov [#allocation14]  }
  0x85   : > { %s304_s20 = sshll.u32 %s3817_s22, 4  ;;  %s328_s1 = sshll.u32 %s3818_s9, 4  ;;  %s305_s20 = int_to_ptr.vmem [resolvable:$true] %s304_s20  ;;  %s329_s1 = int_to_ptr.vmem [resolvable:$true] %s328_s1 }
  0x86   : > { %s3610_s26 = scalar_lea.hbm %s4719_s4, 32 }
  0x87   : > { %p3611_p1 = scmp.ne.s32.totalorder %s4719_s4, %s3610_s26  ;;  %p3617_p12 = scmp.lt.u32.totalorder %s3610_s26, %s4719_s4 }
  0x89   : > { %p3613_p3 = pnand %p3611_p1, %p3928_p8 }
  0x8b   : > { %p3614_p11 = pneg %p3613_p3 }
  0x8d   : > { %p3619_p13 = pnand %p3617_p12, %p3614_p11 }
  0x8f   : > { %3622 = shalt.err (!%p3619_p13)
}
  0x90   : > { %s3623_s28 = scalar_lea.vmem %s305_s20, 32  ;;  %p3631_p7 = scmp.lt.s32.totalorder %s305_s20, %s305_s20 }
  0x91   : > { %p3624_p0 = scmp.ne.s32.totalorder %s305_s20, %s3623_s28  ;;  %p3632_p9 = scmp.lt.s32.totalorder %s3623_s28, %s3623_s28 }
  0x93   : > { %p3626_p2 = pnand %p3624_p0, %p3928_p8  ;;  %p3633_p4 = por %p3632_p9, %p3631_p7 }
  0x95   : > { %p3627_p5 = pneg %p3626_p2 }
  0x97   : > { %p3634_p10 = pnand %p3633_p4, %p3627_p5 }
  0x99   : > { %3637 = shalt.err (!%p3634_p10)
}
  0x9a   : > { %3100 = dma.hbm_to_vmem [thread:$0]  (!%p3912_p6), %s4719_s4, 32, %s305_s20, [#allocation10]  }
  0x9b   : > { %s3638_s9 = scalar_lea.hbm %s4721_s6, 32 }
  0x9c   : > { %p3639_p1 = scmp.ne.s32.totalorder %s4721_s6, %s3638_s9  ;;  %p3645_p12 = scmp.lt.u32.totalorder %s3638_s9, %s4721_s6 }
  0x9e   : > { %p3641_p3 = pnand %p3639_p1, %p3928_p8 }
  0xa0   : > { %p3642_p11 = pneg %p3641_p3 }
  0xa2   : > { %p3647_p13 = pnand %p3645_p12, %p3642_p11 }
  0xa4   : > { %3650 = shalt.err (!%p3647_p13)
}
  0xa5   : > { %s3651_s13 = scalar_lea.vmem %s329_s1, 32  ;;  %p3659_p7 = scmp.lt.s32.totalorder %s329_s1, %s329_s1 }
  0xa6   : > { %p3652_p0 = scmp.ne.s32.totalorder %s329_s1, %s3651_s13  ;;  %p3660_p9 = scmp.lt.s32.totalorder %s3651_s13, %s3651_s13 }
  0xa8   : > { %p3654_p2 = pnand %p3652_p0, %p3928_p8  ;;  %p3661_p4 = por %p3660_p9, %p3659_p7 }
  0xaa   : > { %p3655_p5 = pneg %p3654_p2 }
  0xac   : > { %p3662_p10 = pnand %p3661_p4, %p3655_p5 }
  0xae   : > { %3665 = shalt.err (!%p3662_p10)
}
  0xaf   : > { %3106 = dma.hbm_to_vmem [thread:$0]  (!%p3912_p6), %s4721_s6, 32, %s329_s1, [#allocation13]  }
  0xb0   : > { %s3819_s23 = smov [#allocation17]   ;;  %s3666_s21 = scalar_lea.hbm %s4723_s8, 16 }
  0xb1   : > { %s350_s28 = sshll.u32 %s3819_s23, 4  ;;  %p3667_p1 = scmp.ne.s32.totalorder %s4723_s8, %s3666_s21  ;;  %s351_s28 = int_to_ptr.vmem [resolvable:$true] %s350_s28 }
  0xb2   : > { %p3673_p12 = scmp.lt.u32.totalorder %s3666_s21, %s4723_s8 }
  0xb3   : > { %p3669_p3 = pnand %p3667_p1, %p3928_p8 }
  0xb5   : > { %p3670_p11 = pneg %p3669_p3 }
  0xb7   : > { %p3675_p13 = pnand %p3673_p12, %p3670_p11 }
  0xb9   : > { %3678 = shalt.err (!%p3675_p13)
}
  0xba   : > { %s3679_s1 = scalar_lea.vmem %s351_s28, 16  ;;  %s3686_s26 = scalar_lea.vmem %s351_s28, 32 }
  0xbb   : > { %p3680_p0 = scmp.ne.s32.totalorder %s351_s28, %s3679_s1  ;;  %p3687_p7 = scmp.lt.s32.totalorder %s351_s28, %s351_s28 }
  0xbc   : > { %p3688_p9 = scmp.lt.s32.totalorder %s3686_s26, %s3679_s1 }
  0xbd   : > { %p3682_p2 = pnand %p3680_p0, %p3928_p8 }
  0xbe   : > { %p3689_p4 = por %p3688_p9, %p3687_p7 }
  0xbf   : > { %p3683_p5 = pneg %p3682_p2 }
  0xc1   : > { %p3690_p10 = pnand %p3689_p4, %p3683_p5 }
  0xc3   : > { %3693 = shalt.err (!%p3690_p10)
}
  0xc4   : > { %3112 = dma.hbm_to_vmem [thread:$0]  (!%p3912_p6), %s4723_s8, 16, %s351_s28, [#allocation16]  }
  0xc5   : > { %s2725_s27 = sadd.s32 4294967294, %s3806_s12   ;;  %s4086_s19 = sadd.s32 1, %s3806_s12  }
  0xc6   : > { %s33_s20 = ssub.s32 %s3806_s12, %s4086_s19  ;;  %s36_s14 = sadd.s32 1, %s3802_s11 }
  0xc7   : > { %p34_p8 = scmp.eq.s32.totalorder %s33_s20, 0  ;;  %p43_p1 = scmp.ne.s32.totalorder %s3802_s11, %s3798_s10 }
  0xc8   : > { %p44_p3 = scmp.eq.s32.totalorder %s3806_s12, 0  ;;  %p49_p11 = scmp.ne.s32.totalorder %s3798_s10, %s3794_s30 }
  0xc9   : > { %s4097_s23 = scalar_select %p34_p8, %s3802_s11, %s36_s14  }
  0xca   : > { %p4099_p12 = por %p44_p3, %p43_p1  ;;  %p4749_p13 = scmp.eq.s32.totalorder %s3896_s15, 0 }
  0xcb   : > { %p241_p0 = scmp.eq.s32.totalorder %s3896_s15, 1  ;;  %p247_p2 = scmp.eq.s32.totalorder %s2725_s27, 1 }
  0xcc   : > { %p4105_p6 = por %p4749_p13, %p49_p11  ;;  %p3129_p5 = scmp.lt.s32.totalorder %s3806_s12, 2 }
  0xcd   : > { %s361_s18 = sand.u32 1, %s3802_s11   ;;  %p4112_p7 = por %p241_p0, %p43_p1 }
  0xce   : > { %p4116_p9 = por %p247_p2, %p49_p11  ;;  %s2736_s9 = sshll.u32 %s361_s18, 5 }
  0xcf   : > { %s4751_s21 = scalar_select %p4112_p7, 1, 0 }
  0xd0   : > { %s4752_s22 = scalar_select %p4116_p9, 1, 0 }
  0xd1   : > { %s2917_s24 = sshll.u32 %s3806_s12, 9  ;;  %s365_s29 = scalar_lea.vmem [#allocation3], %s2736_s9 }
  0xd2   : > { %s4124_s26 = scalar_lea.hbm %s4715_s0, %s2917_s24  ;;  %s373_s13 = sshll.u32 %s365_s29, 4  ;;  %s4126_s13 = int_to_ptr.vmem [resolvable:$true] %s373_s13 }
  0xd3   : > { %p4130_p4 = pnand %p3129_p5, %p4099_p12  ;;  %s4134_s20 = scalar_lea.sflag [#allocation4], %s361_s18 }
  0xd4   : > { %s3694_s14 = scalar_lea.hbm %s4124_s26, 512  ;;  %s3699_s25 = scalar_lea.hbm %s4715_s0, 1024 }
  0xd5   : > { %p3695_p10 = scmp.ne.s32.totalorder %s4124_s26, %s3694_s14  ;;  %p3696_p8 = pneg %p4130_p4 }
  0xd6   : > { %p3700_p11 = scmp.lt.u32.totalorder %s4124_s26, %s4715_s0  ;;  %p3701_p12 = scmp.lt.u32.totalorder %s3699_s25, %s3694_s14 }
  0xd7   : > { %p3697_p1 = pnand %p3696_p8, %p3695_p10  ;;  %p3703_p0 = scmp.lt.u32.totalorder %s3694_s14, %s4124_s26 }
  0xd8   : > { %p3702_p13 = por %p3701_p12, %p3700_p11 }
  0xd9   : > { %p3698_p3 = pneg %p3697_p1 }
  0xda   : > { %p3704_p2 = por %p3703_p0, %p3702_p13 }
  0xdc   : > { %p3705_p5 = pnand %p3704_p2, %p3698_p3 }
  0xde   : > { %3708 = shalt.err (!%p3705_p5)
}
  0xdf   : > { %s3709_s18 = scalar_lea.vmem %s4126_s13, 512  ;;  %s3820_s29 = smov [#allocation3]  }
  0xe0   : > { %p3710_p10 = scmp.ne.s32.totalorder %s4126_s13, %s3709_s18  ;;  %s3714_s9 = sshll.u32 %s3820_s29, 4  ;;  %s3715_s9 = int_to_ptr.vmem [resolvable:$false] %s3714_s9 }
  0xe1   : > { %s3716_s24 = scalar_lea.vmem %s3715_s9, 1024  ;;  %p3717_p7 = scmp.lt.s32.totalorder %s4126_s13, %s3715_s9 }
  0xe2   : > { %p3712_p1 = pnand %p3710_p10, %p3696_p8  ;;  %p3718_p11 = scmp.lt.s32.totalorder %s3716_s24, %s3709_s18 }
  0xe4   : > { %p3713_p9 = pneg %p3712_p1  ;;  %p3719_p12 = por %p3718_p11, %p3717_p7 }
  0xe6   : > { %p3720_p13 = pnand %p3719_p12, %p3713_p9 }
  0xe8   : > { %3723 = shalt.err (!%p3720_p13)
}
  0xe9   : > { %s4754_s14 = smov 4   ;;  %s4755_s25 = smov 64  }
  0xea   : > { %3116 = dma.hbm_to_vmem [thread:$0]  (!%p4130_p4), %s4124_s26, 512, %s4126_s13, %s4134_s20, %s4755_s25, %s4755_s25, %s4754_s14  }
  0xeb   : > { %p4756_p8 = scmp.ne.s32.totalorder %s4744_s16, 0 }
  0xed   : > { %385 = sbr.rel (%p4756_p8) target bundleno = 1388 (0x56c), region = 56 }
  0xf4   : > { %s4168_s17 = sand.u32 1, %s3798_s10  }
  0xf5   : > { %s2741_s1 = sshll.u32 %s4168_s17, 5  ;;  %s388_s18 = scalar_lea.sflag [#allocation4], %s4168_s17 }
  0xf6   : > { %s4172_s29 = scalar_lea.vmem [#allocation3], %s2741_s1 }
  0xf7   : > { %3769 = dma.done.wait (%p4105_p6), %s388_s18, 512  }
  0xf8   : > { %3771 = vsyncadd (%p4105_p6), %s388_s18, 4294966784  ;;  %p4757_p7 = scmp.eq.s32.totalorder %s3896_s15, 0 }
  0xfa   : > { %3773 = dma.done.wait (%p4757_p7), [#allocation7], 1040   ;;  %p4758_p9 = pmov %p4757_p7 }
  0xfb   : > { %p4759_p4 = pmov %p4757_p7 }
  0xfc   : > { %3775 = vsyncadd (%p4758_p9), [#allocation7], 4294966256 }
  0xfd   : > { %3777 = dma.done.wait (%p4759_p4), [#allocation10], 6176   ;;  %p4760_p3 = pmov %p4759_p4 }
  0xff   : > { %3779 = vsyncadd (%p4760_p3), [#allocation10], 4294961120  ;;  %p4761_p0 = pmov %p4760_p3 }
 0x101   : > { %3781 = dma.done.wait (%p4761_p0), [#allocation13], 10272   ;;  %p4762_p2 = pmov %p4761_p0 }
 0x102   : > { %p4763_p6 = pmov %p4761_p0 }
 0x103   : > { %3783 = vsyncadd (%p4762_p2), [#allocation13], 4294957024 }
 0x104   : > { %3785 = dma.done.wait (%p4763_p6), [#allocation16], 32   ;;  %p4764_p5 = pmov %p4761_p0 }
 0x105   : > { %v3186_v0 = vld [vmem:[#allocation6] sm:$0xff]   ;;  %v3187_v1 = vld [vmem:[#allocation6 + $0x8] sm:$0xff]   ;;  %v3188_v2 = vld [vmem:[#allocation6 + $0x10] sm:$0xff]   ;;  %v4734_v34 = vmov 0   ;;  %vm641_vm0 = vcmask 1043456   ;;  %vm723_vm3 = vcmask 1046528  }
 0x106   : > { %3787 = vsyncadd (%p4764_p5), [#allocation16], 4294967264  ;;  %2932 = vmatprep.subr.bf16.mxu1 %v3186_v0  ;;  %v3189_v3 = vld [vmem:[#allocation6 + $0x18] sm:$0xff]   ;;  %v3194_v4 = vld [vmem:[%s4172_s29] sm:$0xff]   ;;  %461 = vst [vmem:[#allocation2] sm:$0xf] %v4734_v34 }
 0x107   : > { %2933 = vmatpush3.bf16.msra.mxu1 %v3186_v0  ;;  %2948 = vmatprep.mubr.bf16.mxu1 %v3194_v4  ;;  %v3190_v5 = vld [vmem:[#allocation6 + $0x20] sm:$0xff]   ;;  %v3191_v6 = vld [vmem:[#allocation6 + $0x28] sm:$0xff]   ;;  %v3192_v7 = vld [vmem:[#allocation6 + $0x30] sm:$0xff]   ;;  %462 = vst [vmem:[#allocation2 + $0x18] sm:$0xf] %v4734_v34  ;;  %vm1565_vm4 = vcmask 1044480  }
 0x108   : > { %2934 = vmatprep.subr.bf16.mxu1 %v3187_v1  ;;  %v3193_v8 = vld [vmem:[#allocation6 + $0x38] sm:$0xff]   ;;  %v3200_v9 = vld [vmem:[#allocation9 + $0x4] ss:$8 sps:$4 sm:$0xff]   ;;  %v3198_v12 = vld [vmem:[#allocation9] ss:$8 sps:$4 sm:$0xff]   ;;  %vm1550_vm6 = vcmask 1045504  }
 0x109   : > { %v3195_v10 = vld [vmem:[%s4172_s29 + $0x8] sm:$0xff]   ;;  %v3196_v11 = vld [vmem:[%s4172_s29 + $0x10] sm:$0xff]   ;;  %v3197_v16 = vld [vmem:[%s4172_s29 + $0x18] sm:$0xff]   ;;  %463 = vst [vmem:[#allocation2 + $0x10] sm:$0xf0] %v4734_v34  ;;  %s2750_s16 = sshll.u32 %s4168_s17, 6 }
 0x10a   : > { %v3203_v13 = vld [vmem:[#allocation9 + $0x14] ss:$8 sps:$4 sm:$0xff]   ;;  %v3201_v14 = vld [vmem:[#allocation9 + $0x10] ss:$8 sps:$4 sm:$0xff]   ;;  %v3206_v15 = vld [vmem:[#allocation9 + $0x24] ss:$8 sps:$4 sm:$0xff]  }
 0x10b   : > { %2935 = vmatpush3.bf16.msra.mxu1 %v3187_v1  ;;  %v3204_v17 = vld [vmem:[#allocation9 + $0x20] ss:$8 sps:$4 sm:$0xff]   ;;  %v3209_v18 = vld [vmem:[#allocation9 + $0x34] ss:$8 sps:$4 sm:$0xff]   ;;  %v3207_v19 = vld [vmem:[#allocation9 + $0x30] ss:$8 sps:$4 sm:$0xff]  }
 0x10c   : > { %2936 = vmatprep.subr.bf16.mxu1 %v3188_v2  ;;  %v3212_v20 = vld [vmem:[#allocation9 + $0x44] ss:$8 sps:$4 sm:$0xff]   ;;  %v3210_v21 = vld [vmem:[#allocation9 + $0x40] ss:$8 sps:$4 sm:$0xff]   ;;  %v3215_v22 = vld [vmem:[#allocation9 + $0x54] ss:$8 sps:$4 sm:$0xff]  }
 0x10d   : > { %v3213_v23 = vld [vmem:[#allocation9 + $0x50] ss:$8 sps:$4 sm:$0xff]   ;;  %v3218_v24 = vld [vmem:[#allocation9 + $0x64] ss:$8 sps:$4 sm:$0xff]   ;;  %v3216_v25 = vld [vmem:[#allocation9 + $0x60] ss:$8 sps:$4 sm:$0xff]  }
 0x10e   : > { %v3221_v26 = vld [vmem:[#allocation9 + $0x74] ss:$8 sps:$4 sm:$0xff]   ;;  %v3219_v27 = vld [vmem:[#allocation9 + $0x70] ss:$8 sps:$4 sm:$0xff]   ;;  %v3224_v28 = vld [vmem:[#allocation9 + $0x84] ss:$8 sps:$4 sm:$0xff]  }
 0x10f   : > { %2937 = vmatpush3.bf16.msra.mxu1 %v3188_v2  ;;  %v3222_v29 = vld [vmem:[#allocation9 + $0x80] ss:$8 sps:$4 sm:$0xff]   ;;  %v3227_v30 = vld [vmem:[#allocation9 + $0x94] ss:$8 sps:$4 sm:$0xff]   ;;  %v3225_v31 = vld [vmem:[#allocation9 + $0x90] ss:$8 sps:$4 sm:$0xff]  }
 0x110   : > { %2938 = vmatprep.subr.bf16.mxu1 %v3189_v3  ;;  %v3230_v32 = vld [vmem:[#allocation9 + $0xa4] ss:$8 sps:$4 sm:$0xff]   ;;  %v3228_v33 = vld [vmem:[#allocation9 + $0xa0] ss:$8 sps:$4 sm:$0xff]   ;;  %464 = vst [vmem:[#allocation2 + $0x28] sm:$0xf0] %v4734_v34 }
 0x111   : > { %v3233_v35 = vld [vmem:[#allocation9 + $0xb4] ss:$8 sps:$4 sm:$0xff]   ;;  %v3231_v36 = vld [vmem:[#allocation9 + $0xb0] ss:$8 sps:$4 sm:$0xff]   ;;  %v3236_v37 = vld [vmem:[#allocation9 + $0xc4] ss:$8 sps:$4 sm:$0xff]  }
 0x112   : > { %v3234_v38 = vld [vmem:[#allocation9 + $0xc0] ss:$8 sps:$4 sm:$0xff]   ;;  %v3237_v39 = vld [vmem:[#allocation9 + $0xd0] ss:$8 sps:$4 sm:$0xff]   ;;  %v3239_v40 = vld [vmem:[#allocation9 + $0xd4] ss:$8 sps:$4 sm:$0xff]  }
 0x113   : > { %2939 = vmatpush3.bf16.msra.mxu1 %v3189_v3  ;;  %v3242_v41 = vld [vmem:[#allocation9 + $0xe4] ss:$8 sps:$4 sm:$0xff]   ;;  %v3240_v42 = vld [vmem:[#allocation9 + $0xe0] ss:$8 sps:$4 sm:$0xff]   ;;  %v3245_v43 = vld [vmem:[#allocation9 + $0xf4] ss:$8 sps:$4 sm:$0xff]  }
 0x114   : > { %2940 = vmatprep.subr.bf16.mxu1 %v3190_v5  ;;  %v3243_v44 = vld [vmem:[#allocation9 + $0xf0] ss:$8 sps:$4 sm:$0xff]   ;;  %v3248_v45 = vld [vmem:[#allocation9 + $0x104] ss:$8 sps:$4 sm:$0xff]   ;;  %v2751_v47 = vld [vmem:[#allocation8] ss:$0 sm:$0xff] }
 0x115   : > { %vm670_vm1 = vsmask.f32 7424  ;;  %vm734_vm2 = vsmask.f32 4352  ;;  %vm1503_vm5 = vsmask.f32 6400 }
 0x116   : > { %s4634_s28 = scalar_lea.vmem [#allocation18], %s2750_s16  ;;  %s2919_s26 = sshll.u32 %s3896_s15, 10 }
 0x117   : > { %2941 = vmatpush3.bf16.msra.mxu1 %v3190_v5  ;;  %s2576_s13 = sshll.u32 %s4634_s28, 4  ;;  %s4783_s9 = sld [smem:[#allocation32_spill]]  ;;  %s4669_s13 = int_to_ptr.vmem [resolvable:$true] %s2576_s13 }
 0x118   : > { %2942 = vmatprep.subr.bf16.mxu1 %v3191_v6  ;;  %s2562_s15 = scalar_lea.sflag [#allocation5], %s4168_s17  ;;  %s3724_s14 = scalar_lea.vmem %s4669_s13, 1024 }
 0x119   : > { %p3725_p10 = scmp.ne.s32.totalorder %s4669_s13, %s3724_s14  ;;  %p4784_p1 = scmp.ne.s32.totalorder %s4751_s21, 0 }
 0x11a   : > { %s3822_s25 = smov [#allocation18]  }
 0x11b   : > { %2943 = vmatpush3.bf16.msra.mxu1 %v3191_v6  ;;  %p3726_p11 = pnand %p3725_p10, %p4784_p1  ;;  %s3728_s1 = sshll.u32 %s3822_s25, 4  ;;  %s3729_s1 = int_to_ptr.vmem [resolvable:$false] %s3728_s1 }
 0x11c   : > { %2944 = vmatprep.subr.bf16.mxu1 %v3192_v7  ;;  %s3730_s18 = scalar_lea.vmem %s3729_s1, 2048  ;;  %p3731_p13 = scmp.lt.s32.totalorder %s4669_s13, %s3729_s1 }
 0x11d   : > { %s4667_s24 = scalar_lea.hbm %s4783_s9, %s2919_s26  ;;  %p3727_p12 = pneg %p3726_p11 }
 0x11e   : > { %p3732_p8 = scmp.lt.s32.totalorder %s3730_s18, %s3724_s14 }
 0x11f   : > { %2945 = vmatpush3.bf16.msra.mxu1 %v3192_v7 }
 0x120   : > { %2946 = vmatprep.subr.bf16.mxu1 %v3193_v8  ;;  %p3733_p7 = por %p3732_p8, %p3731_p13 }
 0x122   : > { %p3734_p9 = pnand %p3733_p7, %p3727_p12 }
 0x123   : > { %2947 = vmatpush3.bf16.msra.mxu1 %v3193_v8 }
 0x124   : > { %1183 = vmatprep.subr.bf16.mxu1 %v3200_v9 }
 0x126   : > { %2949 = vmatmul.mubr.bf16.vlgmr.msra.gmra.mrb[0].mxu1 %v3195_v10 }
 0x127   : > { %2952 = vmatprep.mubr.bf16.mxu1 %v3196_v11  ;;  %1184 = vmatpush1.bf16.msra.mxu1 %v3198_v12 }
 0x128   : > { %1185 = vmatprep.subr.bf16.mxu1 %v3203_v13 }
 0x12b   : > { %1186 = vmatpush1.bf16.msra.mxu1 %v3201_v14 }
 0x12c   : > { %1187 = vmatprep.subr.bf16.mxu1 %v3206_v15 }
 0x12e   : > { %2953 = vmatmul.mubr.bf16.gmra.mrb[4].mxu1 %v3197_v16 }
 0x12f   : > { %1188 = vmatpush1.bf16.msra.mxu1 %v3204_v17 }
 0x130   : > { %1189 = vmatprep.subr.bf16.mxu1 %v3209_v18 }
 0x133   : > { %1190 = vmatpush1.bf16.msra.mxu1 %v3207_v19 }
 0x134   : > { %1191 = vmatprep.subr.bf16.mxu1 %v3212_v20 }
 0x137   : > { %1192 = vmatpush1.bf16.msra.mxu1 %v3210_v21 }
 0x138   : > { %1193 = vmatprep.subr.bf16.mxu1 %v3215_v22 }
 0x13b   : > { %1194 = vmatpush1.bf16.msra.mxu1 %v3213_v23 }
 0x13c   : > { %1195 = vmatprep.subr.bf16.mxu1 %v3218_v24 }
 0x13f   : > { %1196 = vmatpush1.bf16.msra.mxu1 %v3216_v25 }
 0x140   : > { %1197 = vmatprep.subr.bf16.mxu1 %v3221_v26 }
 0x143   : > { %1198 = vmatpush1.bf16.msra.mxu1 %v3219_v27 }
 0x144   : > { %1199 = vmatprep.subr.bf16.mxu1 %v3224_v28 }
 0x147   : > { %1200 = vmatpush1.bf16.msra.mxu1 %v3222_v29 }
 0x148   : > { %1201 = vmatprep.subr.bf16.mxu1 %v3227_v30 }
 0x14b   : > { %1202 = vmatpush1.bf16.msra.mxu1 %v3225_v31 }
 0x14c   : > { %1203 = vmatprep.subr.bf16.mxu1 %v3230_v32 }
 0x14f   : > { %1204 = vmatpush1.bf16.msra.mxu1 %v3228_v33 }
 0x150   : > { %1205 = vmatprep.subr.bf16.mxu1 %v3233_v35 }
 0x153   : > { %1206 = vmatpush1.bf16.msra.mxu1 %v3231_v36 }
 0x154   : > { %1207 = vmatprep.subr.bf16.mxu1 %v3236_v37 }
 0x157   : > { %1208 = vmatpush1.bf16.msra.mxu1 %v3234_v38 }
 0x158   : > { %1209 = vmatprep.subr.bf16.mxu1 %v3239_v40 }
 0x15b   : > { %1210 = vmatpush1.bf16.msra.mxu1 %v3237_v39 }
 0x15c   : > { %1211 = vmatprep.subr.bf16.mxu1 %v3242_v41 }
 0x15f   : > { %1212 = vmatpush1.bf16.msra.mxu1 %v3240_v42 }
 0x160   : > { %1213 = vmatprep.subr.bf16.mxu1 %v3245_v43 }
 0x163   : > { %1214 = vmatpush1.bf16.msra.mxu1 %v3243_v44 }
 0x164   : > { %1256 = vmatprep.subr.bf16.mxu1 %v3248_v45 }
 0x1f9   : > { %v2950_v46 = vpop.f32.mrb[0].mxu1 }
 0x1fa   : > { %v602_v48 = vpop.f32.mrb[1].mxu1  ;;  %v4202_v50 = vadd.f32 %v2950_v46, %v2751_v47 }
 0x1fb   : > { %v2951_v49 = vpop.f32.mrb[2].mxu1  ;;  %v4206_v53 = vadd.f32 %v2751_v47, %v602_v48 }
 0x1fc   : > { %v4204_v51 = vadd.f32 %v2951_v49, %v2751_v47  ;;  %v605_v52 = vpop.f32.mrb[3].mxu1 }
 0x1fd   : > { %v4208_v54 = vadd.f32 %v2751_v47, %v605_v52 }
 0x1fe   : > { %v634_v55 = vpack.c.bf16 %v4204_v51, %v4202_v50 }
 0x1ff   : > { %v633_v56 = vpack.c.bf16 %v4208_v54, %v4206_v53 }
 0x200   : > { %v643_v57 = vrot.slane %v634_v55, 4 }
 0x201   : > { %v642_v58 = vrot.slane %v633_v56, 4  ;;  %v2954_v59 = vpop.f32.mrb[4].mxu1 }
 0x202   : > { %656 = vst [vmem:[#allocation2 + $0x10] sm:$0xf] %v643_v57  ;;  %v4214_v60 = vadd.f32 %v2954_v59, %v2751_v47  ;;  %v618_v61 = vpop.f32.mrb[5].mxu1 }
 0x203   : > { %v4217_v62 = vsel %vm641_vm0, %v642_v58, %v643_v57  ;;  %654 = vst [vmem:[#allocation2] sm:$0xf0] %v642_v58  ;;  %v4219_v63 = vadd.f32 %v2751_v47, %v618_v61  ;;  %v2955_v0 = vpop.f32.mrb[6].mxu1 }
 0x204   : > { %v4221_v1 = vadd.f32 %v2955_v0, %v2751_v47  ;;  %v621_v2 = vpop.f32.mrb[7].mxu1  ;;  %v679_v3 = vshll.u32 %v4217_v62, 16  ;;  %v683_v12 = vshrl.u32 %v4217_v62, 16 }
 0x205   : > { %v4224_v4 = vadd.f32 %v2751_v47, %v621_v2 }
 0x206   : > { %v636_v5 = vpack.c.bf16 %v4221_v1, %v4214_v60  ;;  %v681_v8 = vrot.slane %v679_v3, 1  ;;  %v743_v30 = vrot.slane %v683_v12, 3  ;;  %v744_v46 = vrot.slane %v679_v3, 4 }
 0x207   : > { %v635_v6 = vpack.c.bf16 %v4224_v4, %v4219_v63 }
 0x208   : > { %v646_v7 = vrot.slane %v636_v5, 4  ;;  %v685_v18 = vor.u32 %v683_v12, %v681_v8  ;;  %v745_v5 = vor.u32 %v744_v46, %v743_v30 }
 0x209   : > { %v645_v9 = vrot.slane %v635_v6, 4  ;;  %v662_v10 = vld [vmem:[#allocation2 + $0x10] sm:$0xf] }
 0x20a   : > { %659 = vst [vmem:[#allocation2 + $0x28] sm:$0xf] %v646_v7  ;;  %v4230_v11 = vld [vmem:[#allocation2] sm:$0xf0]  ;;  %v687_v13 = vshll.u32 %v662_v10, 16  ;;  %v691_v20 = vshrl.u32 %v662_v10, 16 }
 0x20b   : > { %v660_v14 = vld [vmem:[#allocation2] sm:$0xf8]  ;;  %v4234_v15 = vsel %vm641_vm0, %v645_v9, %v646_v7  ;;  %657 = vst [vmem:[#allocation2 + $0x18] sm:$0xf0] %v645_v9  ;;  %v674_v16 = vshll.u32 %v4230_v11, 16  ;;  %v672_v17 = vshrl.u32 %v4230_v11, 16 }
 0x20c   : > { %v689_v19 = vrot.slane %v687_v13, 1  ;;  %v736_v22 = vshrl.u32 %v660_v14, 16  ;;  %v739_v23 = vshll.u32 %v660_v14, 16  ;;  %v702_v24 = vshll.u32 %v4234_v15, 16  ;;  %v3246_v6 = vld [vmem:[#allocation9 + $0x100] ss:$8 sps:$4 sm:$0xff]  }
 0x20d   : > { %v676_v21 = vrot.slane %v674_v16, 1  ;;  %v706_v35 = vshrl.u32 %v4234_v15, 16  ;;  %v781_v7 = vrot.slane %v691_v20, 3  ;;  %v3251_v10 = vld [vmem:[#allocation9 + $0x114] ss:$8 sps:$4 sm:$0xff]   ;;  %v782_v12 = vrot.slane %v687_v13, 4 }
 0x20e   : > { %v690_v25 = vsel %vm670_vm1, %v685_v18, %v689_v19  ;;  %v693_v26 = vor.u32 %v691_v20, %v689_v19  ;;  %v704_v33 = vrot.slane %v702_v24, 1  ;;  %v738_v38 = vrot.slane %v736_v22, 3  ;;  %v3249_v13 = vld [vmem:[#allocation9 + $0x110] ss:$8 sps:$4 sm:$0xff]  }
 0x20f   : > { %v677_v27 = vor.u32 %v676_v21, %v672_v17  ;;  %v756_v28 = vshrl.u32 %v690_v25, 16  ;;  %v759_v29 = vshll.u32 %v690_v25, 16  ;;  %v741_v39 = vrot.slane %v739_v23, 4 }
 0x210   : > { %v786_v31 = vshrl.u32 %v693_v26, 16  ;;  %v789_v32 = vshll.u32 %v693_v26, 16  ;;  %v708_v56 = vor.u32 %v706_v35, %v704_v33 }
 0x211   : > { %v682_v36 = vsel %vm670_vm1, %v677_v27, %v681_v8  ;;  %v758_v37 = vrot.slane %v756_v28, 3  ;;  %v4244_v40 = vld [vmem:[#allocation2 + $0x28] sm:$0xf]  ;;  %v761_v43 = vrot.slane %v759_v29, 4  ;;  %v742_v58 = vor.u32 %v741_v39, %v738_v38  ;;  %v3254_v27 = vld [vmem:[#allocation9 + $0x124] ss:$8 sps:$4 sm:$0xff]  }
 0x212   : > { %v748_v41 = vshrl.u32 %v682_v36, 16  ;;  %v751_v42 = vshll.u32 %v682_v36, 16  ;;  %v788_v44 = vrot.slane %v786_v31, 3  ;;  %v4246_v45 = vld [vmem:[#allocation2 + $0x18] sm:$0xf0]  ;;  %v791_v47 = vrot.slane %v789_v32, 4 }
 0x213   : > { %v695_v48 = vshrl.u32 %v4246_v45, 16  ;;  %v697_v49 = vshll.u32 %v4246_v45, 16  ;;  %v710_v57 = vshll.u32 %v4244_v40, 16  ;;  %v762_v0 = vor.u32 %v761_v43, %v758_v37  ;;  %v663_v25 = vld [vmem:[#allocation2 + $0x18] sm:$0xf8] }
 0x214   : > { %v750_v52 = vrot.slane %v748_v41, 3  ;;  %v753_v55 = vrot.slane %v751_v42, 4  ;;  %v792_v2 = vor.u32 %v791_v47, %v788_v44  ;;  %v714_v16 = vshrl.u32 %v4244_v40, 16  ;;  %v3252_v41 = vld [vmem:[#allocation9 + $0x120] ss:$8 sps:$4 sm:$0xff]  }
 0x215   : > { %v699_v59 = vrot.slane %v697_v49, 1  ;;  %v712_v3 = vrot.slane %v710_v57, 1  ;;  %v746_v17 = vsel %vm734_vm2, %v742_v58, %v745_v5  ;;  %v783_v32 = vor.u32 %v782_v12, %v781_v7  ;;  %v3257_v43 = vld [vmem:[#allocation9 + $0x134] ss:$8 sps:$4 sm:$0xff]   ;;  %v3258_v7 = vld [vmem:[#allocation9 + $0x140] ss:$8 sps:$4 sm:$0xff]  }
 0x216   : > { %v754_v61 = vor.u32 %v753_v55, %v750_v52  ;;  %v793_v22 = vsel %vm734_vm2, %v762_v0, %v792_v2  ;;  %v807_v36 = vshll.u32 %v663_v25, 16  ;;  %v3255_v55 = vld [vmem:[#allocation9 + $0x130] ss:$8 sps:$4 sm:$0xff]   ;;  %v812_v58 = vrot.slane %v702_v24, 4 }
 0x217   : > { %v700_v8 = vor.u32 %v699_v59, %v695_v48  ;;  %v713_v14 = vsel %vm670_vm1, %v708_v56, %v712_v3  ;;  %v716_v26 = vor.u32 %v714_v16, %v712_v3  ;;  %v784_v44 = vsel %vm734_vm2, %v745_v5, %v783_v32  ;;  %v668_v59 = vld [vmem:[#allocation2 + $0x10] sm:$0x1f] }
 0x218   : > { %v763_v9 = vsel %vm734_vm2, %v754_v61, %v762_v0  ;;  %v824_v19 = vshrl.u32 %v713_v14, 16  ;;  %v827_v21 = vshll.u32 %v713_v14, 16  ;;  %v809_v47 = vrot.slane %v807_v36, 4  ;;  %v3260_v61 = vld [vmem:[#allocation9 + $0x144] ss:$8 sps:$4 sm:$0xff]  }
 0x219   : > { %1215 = vmatprep.mubr.bf16.mxu1 %v763_v9  ;;  %v705_v18 = vsel %vm670_vm1, %v700_v8, %v704_v33  ;;  %v804_v33 = vshrl.u32 %v663_v25, 16  ;;  %v854_v38 = vshrl.u32 %v716_v26, 16  ;;  %v857_v39 = vshll.u32 %v716_v26, 16  ;;  %v3263_v8 = vld [vmem:[#allocation9 + $0x154] ss:$8 sps:$4 sm:$0xff]  }
 0x21a   : > { %1216 = vmatmul.mubr.bf16.vlgmr.msra.gmra.mrb[8].mxu1 %v746_v17  ;;  %v816_v20 = vshrl.u32 %v705_v18, 16  ;;  %v819_v23 = vshll.u32 %v705_v18, 16  ;;  %v826_v30 = vrot.slane %v824_v19, 3  ;;  %v829_v31 = vrot.slane %v827_v21, 4  ;;  %v3261_v17 = vld [vmem:[#allocation9 + $0x150] ss:$8 sps:$4 sm:$0xff]  }
 0x21b   : > { %1225 = vmatprep.mubr.bf16.mxu1 %v793_v22  ;;  %1257 = vmatpush1.bf16.msra.mxu1 %v3246_v6  ;;  %v806_v46 = vrot.slane %v804_v33, 3  ;;  %v856_v49 = vrot.slane %v854_v38, 3  ;;  %v859_v52 = vrot.slane %v857_v39, 4  ;;  %v811_v56 = vrot.slane %v706_v35, 3 }
 0x21c   : > { %1258 = vmatprep.subr.bf16.mxu1 %v3251_v10  ;;  %v818_v28 = vrot.slane %v816_v20, 3  ;;  %v821_v29 = vrot.slane %v819_v23, 4  ;;  %v830_v42 = vor.u32 %v829_v31, %v826_v30  ;;  %v724_v3 = vrot.slane %v4230_v11, 1  ;;  %v3269_v20 = vld [vmem:[#allocation9 + $0x174] ss:$8 sps:$4 sm:$0xff]  }
 0x21d   : > { %v810_v0 = vor.u32 %v809_v47, %v806_v46  ;;  %v860_v2 = vor.u32 %v859_v52, %v856_v49  ;;  %v727_v5 = vrot.slane %v668_v59, 1  ;;  %v813_v6 = vor.u32 %v812_v58, %v811_v56 }
 0x21e   : > { %v822_v37 = vor.u32 %v821_v29, %v818_v28  ;;  %v849_v9 = vrot.slane %v714_v16, 3  ;;  %v850_v35 = vrot.slane %v710_v57, 4  ;;  %v725_v24 = vrot.slane %v4217_v62, 1  ;;  %v3266_v16 = vld [vmem:[#allocation9 + $0x164] ss:$8 sps:$4 sm:$0xff]  }
 0x21f   : > { %1259 = vmatpush1.bf16.msra.mxu1 %v3249_v13  ;;  %v814_v10 = vsel %vm734_vm2, %v810_v0, %v813_v6  ;;  %v861_v12 = vsel %vm734_vm2, %v830_v42, %v860_v2  ;;  %v3264_v62 = vld [vmem:[#allocation9 + $0x160] ss:$8 sps:$4 sm:$0xff]   ;;  %v669_v28 = vld [vmem:[#allocation2 + $0x28] sm:$0x1f]  ;;  %v795_v29 = vshrl.u32 %v727_v5, 16  ;;  %v798_v30 = vshll.u32 %v727_v5, 16 }
 0x220   : > { %1260 = vmatprep.subr.bf16.mxu1 %v3254_v27  ;;  %v831_v48 = vsel %vm734_vm2, %v822_v37, %v830_v42  ;;  %v726_v11 = vsel %vm723_vm3, %v724_v3, %v725_v24  ;;  %v728_v14 = vsel %vm723_vm3, %v725_v24, %v727_v5  ;;  %v851_v18 = vor.u32 %v850_v35, %v849_v9  ;;  %v3267_v27 = vld [vmem:[#allocation9 + $0x170] ss:$8 sps:$4 sm:$0xff]   ;;  %v3272_v9 = vld [vmem:[#allocation12] ss:$8 sps:$4 sm:$0xff]  }
 0x221   : > { %v765_v19 = vshrl.u32 %v726_v11, 16  ;;  %v768_v40 = vshll.u32 %v726_v11, 16  ;;  %v773_v57 = vshrl.u32 %v728_v14, 16  ;;  %v776_v21 = vshll.u32 %v728_v14, 16  ;;  %v3273_v35 = vld [vmem:[#allocation12 + $0x14] ss:$8 sps:$4 sm:$0xff]  }
 0x222   : > { %1226 = vmatmul.mubr.bf16.gmra.mrb[12].mxu1 %v784_v44  ;;  %v852_v22 = vsel %vm734_vm2, %v813_v6, %v851_v18  ;;  %v729_v33 = vrot.slane %v4246_v45, 1  ;;  %v730_v36 = vrot.slane %v4234_v15, 1  ;;  %v732_v37 = vrot.slane %v669_v28, 1  ;;  %v3275_v24 = vld [vmem:[#allocation12 + $0x10] ss:$8 sps:$4 sm:$0xff]  }
 0x223   : > { %1235 = vmatprep.mubr.bf16.mxu1 %v831_v48  ;;  %1261 = vmatpush1.bf16.msra.mxu1 %v3252_v41  ;;  %v767_v23 = vrot.slane %v765_v19, 3  ;;  %v770_v25 = vrot.slane %v768_v40, 4  ;;  %v775_v26 = vrot.slane %v773_v57, 3  ;;  %v778_v13 = vrot.slane %v776_v21, 4  ;;  %v3279_v11 = vld [vmem:[#allocation12 + $0x34] ss:$8 sps:$4 sm:$0xff]  }
 0x224   : > { %1262 = vmatprep.subr.bf16.mxu1 %v3257_v43  ;;  %v797_v38 = vrot.slane %v795_v29, 3  ;;  %v800_v39 = vrot.slane %v798_v30, 4  ;;  %v731_v42 = vsel %vm723_vm3, %v729_v33, %v730_v36  ;;  %v733_v43 = vsel %vm723_vm3, %v730_v36, %v732_v37  ;;  %v3281_v14 = vld [vmem:[#allocation12 + $0x30] ss:$8 sps:$4 sm:$0xff]   ;;  %v3284_v18 = vld [vmem:[#allocation12 + $0x40] ss:$8 sps:$4 sm:$0xff]  }
 0x225   : > { %v771_v31 = vor.u32 %v770_v25, %v767_v23  ;;  %v779_v32 = vor.u32 %v778_v13, %v775_v26  ;;  %v833_v46 = vshrl.u32 %v731_v42, 16  ;;  %v836_v47 = vshll.u32 %v731_v42, 16  ;;  %v3287_v19 = vld [vmem:[#allocation12 + $0x50] ss:$8 sps:$4 sm:$0xff]   ;;  %v3288_v40 = vld [vmem:[#allocation12 + $0x64] ss:$8 sps:$4 sm:$0xff]  }
 0x226   : > { %v801_v44 = vor.u32 %v800_v39, %v797_v38  ;;  %v841_v48 = vshrl.u32 %v733_v43, 16  ;;  %v844_v45 = vshll.u32 %v733_v43, 16  ;;  %v866_v0 = vshll.u32 %v732_v37, 16  ;;  %v3290_v57 = vld [vmem:[#allocation12 + $0x60] ss:$8 sps:$4 sm:$0xff]  }
 0x227   : > { %1263 = vmatpush1.bf16.msra.mxu1 %v3255_v55  ;;  %v780_v41 = vsel %vm734_vm2, %v771_v31, %v779_v32  ;;  %v835_v49 = vrot.slane %v833_v46, 3  ;;  %v838_v52 = vrot.slane %v836_v47, 4  ;;  %v3291_v21 = vld [vmem:[#allocation12 + $0x74] ss:$8 sps:$4 sm:$0xff]   ;;  %v3299_v25 = vld [vmem:[#allocation12 + $0x90] ss:$8 sps:$4 sm:$0xff]  }
 0x228   : > { %1264 = vmatprep.subr.bf16.mxu1 %v3260_v61  ;;  %v802_v15 = vsel %vm734_vm2, %v779_v32, %v801_v44  ;;  %v843_v55 = vrot.slane %v841_v48, 3  ;;  %v846_v56 = vrot.slane %v844_v45, 4  ;;  %v863_v61 = vshrl.u32 %v732_v37, 16  ;;  %v3297_v23 = vld [vmem:[#allocation12 + $0x94] ss:$8 sps:$4 sm:$0xff]  }
 0x229   : > { %v839_v58 = vor.u32 %v838_v52, %v835_v49  ;;  %v868_v5 = vrot.slane %v866_v0, 4  ;;  %v3300_v26 = vld [vmem:[#allocation12 + $0xa4] ss:$8 sps:$4 sm:$0xff]   ;;  %v3302_v13 = vld [vmem:[#allocation12 + $0xa0] ss:$8 sps:$4 sm:$0xff]   ;;  %v933_v0 = vlaneseq }
 0x22a   : > { %1236 = vmatmul.mubr.bf16.gmra.mrb[16].mxu1 %v814_v10  ;;  %v847_v59 = vor.u32 %v846_v56, %v843_v55  ;;  %v865_v3 = vrot.slane %v863_v61, 3  ;;  %v3276_v10 = vld [vmem:[#allocation12 + $0x24] ss:$8 sps:$4 sm:$0xff]   ;;  %v3308_v28 = vld [vmem:[#allocation12 + $0xb0] ss:$8 sps:$4 sm:$0xff]  }
 0x22b   : > { %1245 = vmatprep.mubr.bf16.mxu1 %v861_v12  ;;  %1265 = vmatpush1.bf16.msra.mxu1 %v3258_v7  ;;  %v3278_v12 = vld [vmem:[#allocation12 + $0x20] ss:$8 sps:$4 sm:$0xff]   ;;  %v4291_v30 = vld [vmem:[#allocation12 + $0x204] ss:$8 sps:$4 sm:$0xff]   ;;  %v4293_v32 = vld [vmem:[#allocation12 + $0x214] ss:$8 sps:$4 sm:$0xff]  }
 0x22c   : > { %1266 = vmatprep.subr.bf16.mxu1 %v3263_v8  ;;  %v848_v2 = vsel %vm734_vm2, %v839_v58, %v847_v59  ;;  %v869_v6 = vor.u32 %v868_v5, %v865_v3  ;;  %v3270_v8 = vld [vmem:[#allocation12 + $0x4] ss:$8 sps:$4 sm:$0xff]   ;;  %v4289_v29 = vld [vmem:[#allocation12 + $0x200] ss:$8 sps:$4 sm:$0xff]   ;;  %v3315_v36 = vld [vmem:[#allocation12 + $0xd4] ss:$8 sps:$4 sm:$0xff]  }
 0x22d   : > { %2128 = vmatprep.subr.bf16.mxu0 %v3270_v8  ;;  %v3309_v31 = vld [vmem:[#allocation12 + $0xc4] ss:$8 sps:$4 sm:$0xff]   ;;  %v3314_v33 = vld [vmem:[#allocation12 + $0xc0] ss:$8 sps:$4 sm:$0xff]   ;;  %v4297_v37 = vld [vmem:[#allocation12 + $0x210] ss:$8 sps:$4 sm:$0xff]  }
 0x22e   : > { %v870_v7 = vsel %vm734_vm2, %v847_v59, %v869_v6  ;;  %2129 = vmatpush1.bf16.msra.mxu0 %v3272_v9  ;;  %v4300_v38 = vld [vmem:[#allocation12 + $0x224] ss:$8 sps:$4 sm:$0xff]   ;;  %v3320_v39 = vld [vmem:[#allocation12 + $0xd0] ss:$8 sps:$4 sm:$0xff]   ;;  %v4303_v42 = vld [vmem:[#allocation12 + $0x220] ss:$8 sps:$4 sm:$0xff]  }
 0x22f   : > { %1267 = vmatpush1.bf16.msra.mxu1 %v3261_v17  ;;  %2130 = vmatprep.subr.bf16.mxu0 %v3273_v35  ;;  %v3282_v17 = vld [vmem:[#allocation12 + $0x44] ss:$8 sps:$4 sm:$0xff]   ;;  %v4306_v43 = vld [vmem:[#allocation12 + $0x234] ss:$8 sps:$4 sm:$0xff]   ;;  %v3326_v44 = vld [vmem:[#allocation12 + $0xe0] ss:$8 sps:$4 sm:$0xff]  }
 0x230   : > { %1268 = vmatprep.subr.bf16.mxu1 %v3266_v16  ;;  %v3285_v16 = vld [vmem:[#allocation12 + $0x54] ss:$8 sps:$4 sm:$0xff]   ;;  %v4309_v47 = vld [vmem:[#allocation12 + $0x230] ss:$8 sps:$4 sm:$0xff]   ;;  %v4312_v48 = vld [vmem:[#allocation12 + $0x244] ss:$8 sps:$4 sm:$0xff]  }
 0x231   : > { %v3327_v46 = vld [vmem:[#allocation12 + $0xf4] ss:$8 sps:$4 sm:$0xff]   ;;  %v3332_v45 = vld [vmem:[#allocation12 + $0xf0] ss:$8 sps:$4 sm:$0xff]   ;;  %v4315_v49 = vld [vmem:[#allocation12 + $0x240] ss:$8 sps:$4 sm:$0xff]  }
 0x232   : > { %1246 = vmatmul.mubr.bf16.gmra.mrb[20].mxu1 %v852_v22  ;;  %2131 = vmatpush1.bf16.msra.mxu0 %v3275_v24  ;;  %v3294_v22 = vld [vmem:[#allocation12 + $0x84] ss:$8 sps:$4 sm:$0xff]   ;;  %v4318_v52 = vld [vmem:[#allocation12 + $0x254] ss:$8 sps:$4 sm:$0xff]   ;;  %v4321_v55 = vld [vmem:[#allocation12 + $0x250] ss:$8 sps:$4 sm:$0xff]  }
 0x233   : > { %1269 = vmatpush1.bf16.msra.mxu1 %v3264_v62  ;;  %1288 = vmatprep.mubr.bf16.mxu1 %v4734_v34  ;;  %v3293_v62 = vld [vmem:[#allocation12 + $0x70] ss:$8 sps:$4 sm:$0xff]   ;;  %v4324_v56 = vld [vmem:[#allocation12 + $0x264] ss:$8 sps:$4 sm:$0xff]   ;;  %v4327_v58 = vld [vmem:[#allocation12 + $0x260] ss:$8 sps:$4 sm:$0xff]  }
 0x234   : > { %1270 = vmatprep.subr.bf16.mxu1 %v3269_v20  ;;  %2132 = vmatprep.subr.bf16.mxu0 %v3276_v10  ;;  %v3296_v20 = vld [vmem:[#allocation12 + $0x80] ss:$8 sps:$4 sm:$0xff]   ;;  %v4330_v59 = vld [vmem:[#allocation12 + $0x274] ss:$8 sps:$4 sm:$0xff]   ;;  %v4333_v61 = vld [vmem:[#allocation12 + $0x270] ss:$8 sps:$4 sm:$0xff]  }
 0x235   : > { %v931_v5 = vld [vmem:[#allocation11] sm:$0x3] }
 0x236   : > { %2133 = vmatpush1.bf16.msra.mxu0 %v3278_v12 }
 0x237   : > { %1271 = vmatpush1.bf16.msra.mxu1 %v3267_v27  ;;  %2134 = vmatprep.subr.bf16.mxu0 %v3279_v11  ;;  %v3303_v27 = vld [vmem:[#allocation12 + $0xb4] ss:$8 sps:$4 sm:$0xff]  }
 0x238   : > { %2956 = vmatprep.subr.bf16.mxu1 %v4291_v30 }
 0x23a   : > { %1289 = vmatmul.mubr.bf16.vlgmr.msra.gmra.mrb[8].mxu1 %v780_v41  ;;  %2135 = vmatpush1.bf16.msra.mxu0 %v3281_v14  ;;  %v3321_v41 = vld [vmem:[#allocation12 + $0xe4] ss:$8 sps:$4 sm:$0xff]  }
 0x23b   : > { %1298 = vmatprep.mubr.bf16.mxu1 %v4734_v34  ;;  %2136 = vmatprep.subr.bf16.mxu0 %v3282_v17 }
 0x23c   : > { %2964 = vmatpush1.bf16.msra.mxu1 %v4289_v29 }
 0x23d   : > { %2957 = vmatprep.subr.bf16.mxu1 %v4293_v32 }
 0x23e   : > { %2137 = vmatpush1.bf16.msra.mxu0 %v3284_v18 }
 0x23f   : > { %2138 = vmatprep.subr.bf16.mxu0 %v3285_v16 }
 0x240   : > { %2965 = vmatpush1.bf16.msra.mxu1 %v4297_v37 }
 0x241   : > { %2958 = vmatprep.subr.bf16.mxu1 %v4300_v38 }
 0x242   : > { %1299 = vmatmul.mubr.bf16.gmra.mrb[12].mxu1 %v802_v15  ;;  %2139 = vmatpush1.bf16.msra.mxu0 %v3287_v19  ;;  %v3335_v15 = vld [vmem:[#allocation12 + $0x104] ss:$8 sps:$4 sm:$0xff]  }
 0x243   : > { %1308 = vmatprep.mubr.bf16.mxu1 %v4734_v34  ;;  %2140 = vmatprep.subr.bf16.mxu0 %v3288_v40 }
 0x244   : > { %2966 = vmatpush1.bf16.msra.mxu1 %v4303_v42 }
 0x245   : > { %2959 = vmatprep.subr.bf16.mxu1 %v4306_v43 }
 0x246   : > { %2141 = vmatpush1.bf16.msra.mxu0 %v3290_v57 }
 0x247   : > { %2142 = vmatprep.subr.bf16.mxu0 %v3291_v21 }
 0x248   : > { %2967 = vmatpush1.bf16.msra.mxu1 %v4309_v47 }
 0x249   : > { %2960 = vmatprep.subr.bf16.mxu1 %v4312_v48 }
 0x24a   : > { %1309 = vmatmul.mubr.bf16.gmra.mrb[16].mxu1 %v848_v2  ;;  %2143 = vmatpush1.bf16.msra.mxu0 %v3293_v62  ;;  %v4337_v2 = vshrl.u32 %v933_v0, 7 }
 0x24b   : > { %1318 = vmatprep.mubr.bf16.mxu1 %v4734_v34  ;;  %2144 = vmatprep.subr.bf16.mxu0 %v3294_v22 }
 0x24c   : > { %2968 = vmatpush1.bf16.msra.mxu1 %v4315_v49  ;;  %v4731_v3 = vsub.s32 1, %v4337_v2 }
 0x24d   : > { %2961 = vmatprep.subr.bf16.mxu1 %v4318_v52 }
 0x24e   : > { %2145 = vmatpush1.bf16.msra.mxu0 %v3296_v20  ;;  %v940_v6 = vrot.slane %v931_v5, %v4731_v3 }
 0x24f   : > { %2146 = vmatprep.subr.bf16.mxu0 %v3297_v23 }
 0x250   : > { %2969 = vmatpush1.bf16.msra.mxu1 %v4321_v55 }
 0x251   : > { %2962 = vmatprep.subr.bf16.mxu1 %v4324_v56 }
 0x252   : > { %1319 = vmatmul.mubr.bf16.gmra.mrb[20].mxu1 %v870_v7  ;;  %2147 = vmatpush1.bf16.msra.mxu0 %v3299_v25 }
 0x253   : > { %2326 = vmatprep.mubr.bf16.mxu1 %v4734_v34  ;;  %2148 = vmatprep.subr.bf16.mxu0 %v3300_v26 }
 0x254   : > { %2970 = vmatpush1.bf16.msra.mxu1 %v4327_v58 }
 0x255   : > { %2963 = vmatprep.subr.bf16.mxu1 %v4330_v59 }
 0x256   : > { %2149 = vmatpush1.bf16.msra.mxu0 %v3302_v13 }
 0x257   : > { %2150 = vmatprep.subr.bf16.mxu0 %v3303_v27 }
 0x258   : > { %2971 = vmatpush1.bf16.msra.mxu1 %v4333_v61 }
 0x25a   : > { %2151 = vmatpush1.bf16.msra.mxu0 %v3308_v28 }
 0x25b   : > { %2152 = vmatprep.subr.bf16.mxu0 %v3309_v31  ;;  %v4732_v31 = vsub.s32 0, %v4337_v2 }
 0x25e   : > { %2153 = vmatpush1.bf16.msra.mxu0 %v3314_v33 }
 0x25f   : > { %2154 = vmatprep.subr.bf16.mxu0 %v3315_v36 }
 0x262   : > { %2155 = vmatpush1.bf16.msra.mxu0 %v3320_v39 }
 0x263   : > { %2156 = vmatprep.subr.bf16.mxu0 %v3321_v41 }
 0x266   : > { %2157 = vmatpush1.bf16.msra.mxu0 %v3326_v44  ;;  %v4351_v44 = vrot.slane %v931_v5, %v4732_v31  ;;  %v1385_v5 = vmul.f32 0.70710677, %v4206_v53 }
 0x267   : > { %2158 = vmatprep.subr.bf16.mxu0 %v3327_v46 }
 0x26a   : > { %2159 = vmatpush1.bf16.msra.mxu0 %v3332_v45 }
 0x26b   : > { %2201 = vmatprep.subr.bf16.mxu0 %v3335_v15 }
 0x30d   : > { %v1290_v7 = vpop.f32.mrb[8].mxu1 }
 0x30e   : > { %v1292_v8 = vpop.f32.mrb[9].mxu1 }
 0x30f   : > { %v2973_v9 = vadd.f32 %v1292_v8, %v940_v6  ;;  %v1294_v35 = vpop.f32.mrb[10].mxu1 }
 0x310   : > { %v1296_v24 = vpop.f32.mrb[11].mxu1 }
 0x311   : > { %v2812_v10 = vmul.f32 -1.442695, %v2973_v9  ;;  %v2975_v12 = vadd.f32 %v1296_v24, %v940_v6 }
 0x313   : > { %3390 = vpow2.f32 %v2812_v10  ;;  %v2813_v11 = vmul.f32 -1.442695, %v2975_v12  ;;  %v2972_v12 = vadd.f32 %v1290_v7, %v4351_v44 }
 0x315   : > { %3392 = vpow2.f32 %v2813_v11  ;;  %v1300_v14 = vpop.f32.mrb[12].mxu1 }
 0x316   : > { %v1302_v17 = vpop.f32.mrb[13].mxu1 }
 0x317   : > { %v2977_v18 = vadd.f32 %v1302_v17, %v940_v6  ;;  %v4342_v16 = vpop.f32.mrb[14].mxu1 }
 0x318   : > { %v1306_v19 = vpop.f32.mrb[15].mxu1 }
 0x319   : > { %v2814_v40 = vmul.f32 -1.442695, %v2977_v18  ;;  %v2979_v57 = vadd.f32 %v1306_v19, %v940_v6 }
 0x31b   : > { %3394 = vpow2.f32 %v2814_v40  ;;  %v2815_v21 = vmul.f32 -1.442695, %v2979_v57  ;;  %v2974_v40 = vadd.f32 %v1294_v35, %v4351_v44  ;;  %v2976_v35 = vadd.f32 %v1300_v14, %v4351_v44 }
 0x31d   : > { %v3391_v62 = vpop.eup %3390  ;;  %3396 = vpow2.f32 %v2815_v21  ;;  %v4344_v22 = vpop.f32.mrb[16].mxu1 }
 0x31e   : > { %v1353_v20 = vadd.f32 1.0, %v3391_v62  ;;  %v1312_v23 = vpop.f32.mrb[17].mxu1 }
 0x31f   : > { %v3393_v25 = vpop.eup %3392  ;;  %v2981_v26 = vadd.f32 %v1312_v23, %v940_v6  ;;  %v4346_v13 = vpop.f32.mrb[18].mxu1 }
 0x320   : > { %3398 = vrcp.f32 %v1353_v20  ;;  %v1354_v27 = vadd.f32 1.0, %v3393_v25  ;;  %v1316_v28 = vpop.f32.mrb[19].mxu1  ;;  %v1386_v20 = vmul.f32 0.70710677, %v4208_v54 }
 0x321   : > { %v2816_v33 = vmul.f32 -1.442695, %v2981_v26  ;;  %v2983_v36 = vadd.f32 %v1316_v28, %v940_v6 }
 0x322   : > { %3400 = vrcp.f32 %v1354_v27 }
 0x323   : > { %3402 = vpow2.f32 %v2816_v33  ;;  %v2817_v39 = vmul.f32 -1.442695, %v2983_v36  ;;  %v1387_v33 = vmul.f32 0.70710677, %v4202_v50 }
 0x325   : > { %v3395_v41 = vpop.eup %3394  ;;  %3404 = vpow2.f32 %v2817_v39  ;;  %v4353_v46 = vpop.f32.mrb[20].mxu1  ;;  %v2978_v39 = vadd.f32 %v4342_v16, %v4351_v44  ;;  %v2980_v16 = vadd.f32 %v4344_v22, %v4351_v44 }
 0x326   : > { %v1355_v45 = vadd.f32 1.0, %v3395_v41  ;;  %v1322_v15 = vpop.f32.mrb[21].mxu1 }
 0x327   : > { %v3397_v0 = vpop.eup %3396  ;;  %v2985_v8 = vadd.f32 %v1322_v15, %v940_v6  ;;  %v4355_v9 = vpop.f32.mrb[22].mxu1  ;;  %v1388_v15 = vmul.f32 0.70710677, %v4204_v51  ;;  %v1389_v51 = vmul.f32 0.70710677, %v4219_v63 }
 0x328   : > { %3406 = vrcp.f32 %v1355_v45  ;;  %v1356_v24 = vadd.f32 1.0, %v3397_v0  ;;  %v1326_v10 = vpop.f32.mrb[23].mxu1  ;;  %v1391_v63 = vmul.f32 0.70710677, %v4214_v60 }
 0x329   : > { %v2818_v11 = vmul.f32 -1.442695, %v2985_v8  ;;  %v2987_v17 = vadd.f32 %v1326_v10, %v940_v6 }
 0x32a   : > { %v3399_v18 = vpop.eup %3398  ;;  %3408 = vrcp.f32 %v1356_v24 }
 0x32b   : > { %v1377_v19 = vmul.f32 %v3399_v18, %v2972_v12  ;;  %3410 = vpow2.f32 %v2818_v11  ;;  %v2819_v57 = vmul.f32 -1.442695, %v2987_v17 }
 0x32c   : > { %v3401_v21 = vpop.eup %3400 }
 0x32d   : > { %v3403_v62 = vpop.eup %3402  ;;  %v4361_v23 = vadd.f32 %v1385_v5, %v1377_v19  ;;  %v1378_v25 = vmul.f32 %v3401_v21, %v2974_v40  ;;  %3412 = vpow2.f32 %v2819_v57  ;;  %v2982_v5 = vadd.f32 %v4346_v13, %v4351_v44 }
 0x32e   : > { %v1357_v7 = vadd.f32 1.0, %v3403_v62  ;;  %v1390_v57 = vmul.f32 0.70710677, %v4224_v4 }
 0x32f   : > { %4765 = vst [vmem:[#allocation25_spill] sm:$0xff] %v4361_v23  ;;  %v3405_v26 = vpop.eup %3404  ;;  %v4363_v6 = vadd.f32 %v1386_v20, %v1378_v25 }
 0x330   : > { %3414 = vrcp.f32 %v1357_v7  ;;  %v1358_v53 = vadd.f32 1.0, %v3405_v26  ;;  %v1392_v7 = vmul.f32 0.70710677, %v4221_v1 }
 0x331   : > { %4766 = vst [vmem:[#allocation26_spill] sm:$0xff] %v4363_v6  ;;  %v1401_v27 = vpack.c.bf16 %v4363_v6, %v4361_v23  ;;  %v3356_v23 = vld [vmem:[#allocation12 + $0x144] ss:$8 sps:$4 sm:$0xff]  }
 0x332   : > { %v3407_v28 = vpop.eup %3406  ;;  %3416 = vrcp.f32 %v1358_v53 }
 0x333   : > { %v1409_v54 = vrot.slane %v1401_v27, 4  ;;  %v1379_v36 = vmul.f32 %v3407_v28, %v2976_v35  ;;  %v2984_v28 = vadd.f32 %v4353_v46, %v4351_v44 }
 0x334   : > { %v3409_v41 = vpop.eup %3408 }
 0x335   : > { %v3411_v45 = vpop.eup %3410  ;;  %1421 = vst [vmem:[#allocation2] sm:$0xf0] %v1409_v54  ;;  %v4372_v0 = vadd.f32 %v1387_v33, %v1379_v36  ;;  %v1380_v8 = vmul.f32 %v3409_v41, %v2978_v39  ;;  %v2986_v33 = vadd.f32 %v4355_v9, %v4351_v44 }
 0x336   : > { %v1359_v24 = vadd.f32 1.0, %v3411_v45 }
 0x337   : > { %4767 = vst [vmem:[#allocation27_spill] sm:$0xff] %v4372_v0  ;;  %v3413_v10 = vpop.eup %3412  ;;  %v4374_v14 = vadd.f32 %v1388_v15, %v1380_v8 }
 0x338   : > { %3418 = vrcp.f32 %v1359_v24  ;;  %v1360_v12 = vadd.f32 1.0, %v3413_v10 }
 0x339   : > { %4768 = vst [vmem:[#allocation28_spill] sm:$0xff] %v4374_v14  ;;  %v1402_v50 = vpack.c.bf16 %v4374_v14, %v4372_v0 }
 0x33a   : > { %v3415_v11 = vpop.eup %3414  ;;  %3420 = vrcp.f32 %v1360_v12 }
 0x33b   : > { %v1410_v17 = vrot.slane %v1402_v50, 4  ;;  %v1381_v18 = vmul.f32 %v3415_v11, %v2980_v16 }
 0x33c   : > { %v3417_v19 = vpop.eup %3416  ;;  %v1427_v40 = vld [vmem:[#allocation2] sm:$0xf8] }
 0x33d   : > { %v4385_v21 = vsel %vm641_vm0, %v1409_v54, %v1410_v17  ;;  %1423 = vst [vmem:[#allocation2 + $0x10] sm:$0xf] %v1410_v17  ;;  %v4387_v62 = vadd.f32 %v1389_v51, %v1381_v18  ;;  %v1382_v22 = vmul.f32 %v3417_v19, %v2982_v5  ;;  %v1444_v20 = vshll.u32 %v1427_v40, 16  ;;  %v1435_v4 = vld [vmem:[#allocation2] sm:$0xf0] }
 0x33e   : > { %v1449_v25 = vshll.u32 %v4385_v21, 16  ;;  %v1442_v13 = vshrl.u32 %v1427_v40, 16  ;;  %v1453_v1 = vshrl.u32 %v4385_v21, 16  ;;  %v1566_v36 = vrot.slane %v1427_v40, 3 }
 0x33f   : > { %v4392_v26 = vadd.f32 %v1390_v57, %v1382_v22  ;;  %v1446_v53 = vrot.slane %v1444_v20, 1  ;;  %v1567_v39 = vrot.slane %v4385_v21, 3  ;;  %v1505_v15 = vshrl.u32 %v1435_v4, 16 }
 0x340   : > { %v1451_v27 = vrot.slane %v1449_v25, 1  ;;  %v1508_v8 = vshll.u32 %v1435_v4, 16  ;;  %v1493_v50 = vrot.slane %v1435_v4, 1  ;;  %v1494_v44 = vrot.slane %v4385_v21, 1 }
 0x341   : > { %v1403_v35 = vpack.c.bf16 %v4392_v26, %v4387_v62  ;;  %v1447_v60 = vor.u32 %v1446_v53, %v1442_v13  ;;  %v1512_v5 = vrot.slane %v1453_v1, 1  ;;  %v1513_v19 = vrot.slane %v1449_v25, 2 }
 0x342   : > { %v3419_v54 = vpop.eup %3418  ;;  %v1455_v17 = vor.u32 %v1453_v1, %v1451_v27  ;;  %v1495_v53 = vsel %vm723_vm3, %v1493_v50, %v1494_v44 }
 0x343   : > { %v1412_v41 = vrot.slane %v1403_v35, 4  ;;  %v1383_v45 = vmul.f32 %v3419_v54, %v2984_v28  ;;  %v1452_v12 = vsel %vm670_vm1, %v1447_v60, %v1451_v27  ;;  %v1572_v60 = vrot.slane %v1495_v53, 3 }
 0x344   : > { %v3421_v24 = vpop.eup %3420  ;;  %v1433_v10 = vld [vmem:[#allocation2 + $0x10] sm:$0xf]  ;;  %v1569_v13 = vrot.slane %v1452_v12, 3  ;;  %v4422_v12 = vrot.slane %v1508_v8, 2  ;;  %v3339_v8 = vld [vmem:[#allocation12 + $0x110] ss:$8 sps:$4 sm:$0xff]  }
 0x345   : > { %v4403_v46 = vld [vmem:[#allocation2 + $0x10] sm:$0x1f]  ;;  %1424 = vst [vmem:[#allocation2 + $0x18] sm:$0xf0] %v1412_v41  ;;  %v4406_v9 = vadd.f32 %v1391_v63, %v1383_v45  ;;  %v1384_v16 = vmul.f32 %v3421_v24, %v2986_v33  ;;  %v1457_v11 = vshll.u32 %v1433_v10, 16  ;;  %v1496_v51 = vrot.slane %v1433_v10, 1 }
 0x346   : > { %v1461_v18 = vshrl.u32 %v1433_v10, 16  ;;  %v1517_v22 = vshrl.u32 %v4403_v46, 16  ;;  %v1520_v20 = vshll.u32 %v4403_v46, 16  ;;  %v1568_v63 = vsel %vm1565_vm4, %v1566_v36, %v1567_v39  ;;  %v3333_v33 = vld [vmem:[#allocation12 + $0x100] ss:$8 sps:$4 sm:$0xff]  }
 0x347   : > { %4769 = vst [vmem:[#allocation29_spill] sm:$0xff] %v4406_v9  ;;  %v4408_v40 = vadd.f32 %v1392_v7, %v1384_v16  ;;  %v1459_v57 = vrot.slane %v1457_v11, 1  ;;  %v1497_v27 = vsel %vm723_vm3, %v1494_v44, %v1496_v51  ;;  %v1429_v36 = vld [vmem:[#allocation2 + $0x10] sm:$0x7]  ;;  %v4420_v10 = vrot.slane %v1505_v15, 1 }
 0x348   : > { %v1519_v35 = vrot.slane %v1517_v22, 1  ;;  %v1522_v54 = vrot.slane %v1520_v20, 2  ;;  %v1573_v1 = vrot.slane %v1497_v27, 3  ;;  %v3341_v44 = vld [vmem:[#allocation12 + $0x114] ss:$8 sps:$4 sm:$0xff]   ;;  %v1585_v53 = vrot.slane %v1496_v51, 3 }
 0x349   : > { %4770 = vst [vmem:[#allocation30_spill] sm:$0xff] %v4408_v40  ;;  %v1404_v25 = vpack.c.bf16 %v4408_v40, %v4406_v9  ;;  %v1460_v7 = vsel %vm670_vm1, %v1455_v17, %v1459_v57  ;;  %v1463_v4 = vor.u32 %v1461_v18, %v1459_v57  ;;  %v4425_v17 = vor.u32 %v1513_v19, %v1512_v5 }
 0x34a   : > { %v1570_v28 = vrot.slane %v1460_v7, 3  ;;  %v1523_v18 = vor.u32 %v1522_v54, %v1519_v35  ;;  %v4428_v57 = vsel %vm1565_vm4, %v1572_v60, %v1573_v1 }
 0x34b   : > { %v1413_v45 = vrot.slane %v1404_v25, 4  ;;  %v1583_v24 = vrot.slane %v1463_v4, 3 }
 0x34c   : > { %v1571_v50 = vsel %vm1565_vm4, %v1569_v13, %v1570_v28  ;;  %v1440_v16 = vld [vmem:[#allocation2 + $0x18] sm:$0xe0]  ;;  %v1581_v13 = vrot.slane %v1429_v36, 3  ;;  %v4441_v35 = vsel %vm1503_vm5, %v4425_v17, %v1523_v18  ;;  %v1587_v51 = vrot.slane %v1523_v18, 3 }
 0x34d   : > { %v1430_v11 = vld [vmem:[#allocation2 + $0x18] sm:$0xf8]  ;;  %v4431_v22 = vsel %vm641_vm0, %v1412_v41, %v1413_v45  ;;  %1426 = vst [vmem:[#allocation2 + $0x28] sm:$0xf] %v1413_v45  ;;  %2160 = vmatprep.mubr.bf16.mxu0 %v1571_v50  ;;  %v1584_v15 = vsel %vm1565_vm4, %v1570_v28, %v1583_v24  ;;  %v1556_v20 = vrot.slane %v1440_v16, 2  ;;  %v4733_v60 = vrot.slane %v4441_v35, 3 }
 0x34e   : > { %2161 = vmatmul.mubr.bf16.vlgmr.msra.gmra.mrb[0].mxu0 %v1568_v63  ;;  %v1557_v27 = vrot.slane %v4431_v22, 2  ;;  %v1467_v5 = vshll.u32 %v1430_v11, 16  ;;  %v1472_v19 = vshll.u32 %v4431_v22, 16  ;;  %v4436_v25 = vld [vmem:[#allocation2 + $0x18] sm:$0xf0]  ;;  %v1465_v7 = vshrl.u32 %v1430_v11, 16 }
 0x34f   : > { %2202 = vmatpush1.bf16.msra.mxu0 %v3333_v33  ;;  %2170 = vmatprep.mubr.bf16.mxu0 %v1584_v15  ;;  %v3347_v41 = vld [vmem:[#allocation12 + $0x124] ss:$8 sps:$4 sm:$0xff]   ;;  %v1476_v4 = vshrl.u32 %v4431_v22, 16  ;;  %v1591_v28 = vrot.slane %v1430_v11, 3  ;;  %v1592_v54 = vrot.slane %v4431_v22, 3  ;;  %v4449_v36 = vsel %vm1565_vm4, %v1573_v1, %v1585_v53 }
 0x350   : > { %2203 = vmatprep.subr.bf16.mxu0 %v3341_v44  ;;  %v1469_v63 = vrot.slane %v1467_v5, 1  ;;  %v4445_v45 = vld [vmem:[#allocation2] sm:$0xe0]  ;;  %v1558_v33 = vsel %vm1550_vm6, %v1556_v20, %v1557_v27  ;;  %v1474_v24 = vrot.slane %v1472_v19, 1  ;;  %v1526_v50 = vshrl.u32 %v4436_v25, 16 }
 0x351   : > { %v3345_v16 = vld [vmem:[#allocation12 + $0x120] ss:$8 sps:$4 sm:$0xff]   ;;  %v4455_v44 = vsel %vm1565_vm4, %v4733_v60, %v1587_v51  ;;  %v3353_v11 = vld [vmem:[#allocation12 + $0x134] ss:$8 sps:$4 sm:$0xff]   ;;  %v1529_v18 = vshll.u32 %v4436_v25, 16  ;;  %v1533_v5 = vrot.slane %v1476_v4, 1  ;;  %v1582_v1 = vsel %vm1565_vm4, %v1567_v39, %v1581_v13 }
 0x352   : > { %v1470_v15 = vor.u32 %v1469_v63, %v1465_v7  ;;  %v1534_v3 = vrot.slane %v1472_v19, 2  ;;  %v1603_v7 = vrot.slane %v1558_v33, 3  ;;  %v1528_v31 = vrot.slane %v1526_v50, 1  ;;  %v3351_v13 = vld [vmem:[#allocation12 + $0x130] ss:$8 sps:$4 sm:$0xff]  }
 0x353   : > { %2204 = vmatpush1.bf16.msra.mxu0 %v3339_v8  ;;  %v1593_v19 = vsel %vm1565_vm4, %v1591_v28, %v1592_v54  ;;  %v1531_v20 = vrot.slane %v1529_v18, 2 }
 0x354   : > { %2205 = vmatprep.subr.bf16.mxu0 %v3347_v41  ;;  %v1438_v53 = vld [vmem:[#allocation2 + $0x28] sm:$0x1f]  ;;  %v1475_v60 = vsel %vm670_vm1, %v1470_v15, %v1474_v24  ;;  %v1478_v41 = vor.u32 %v1476_v4, %v1474_v24  ;;  %v1535_v14 = vor.u32 %v1534_v3, %v1533_v5  ;;  %v1498_v3 = vrot.slane %v4436_v25, 1 }
 0x355   : > { %v1434_v63 = vld [vmem:[#allocation2 + $0x28] sm:$0xf]  ;;  %v1559_v8 = vrot.slane %v1438_v53, 2  ;;  %v1538_v39 = vshrl.u32 %v1438_v53, 16  ;;  %v1541_v50 = vshll.u32 %v1438_v53, 16  ;;  %v1594_v15 = vrot.slane %v1475_v60, 3 }
 0x356   : > { %v1480_v34 = vshll.u32 %v1434_v63, 16  ;;  %2171 = vmatmul.mubr.bf16.gmra.mrb[4].mxu0 %v1582_v1  ;;  %v1484_v51 = vshrl.u32 %v1434_v63, 16  ;;  %v1532_v40 = vor.u32 %v1531_v20, %v1528_v31  ;;  %v1499_v31 = vrot.slane %v4431_v22, 1  ;;  %v3359_v25 = vld [vmem:[#allocation12 + $0x154] ss:$8 sps:$4 sm:$0xff]  }
 0x357   : > { %2206 = vmatpush1.bf16.msra.mxu0 %v3345_v16  ;;  %v1560_v33 = vsel %vm1550_vm6, %v1557_v27, %v1559_v8  ;;  %v1540_v9 = vrot.slane %v1538_v39, 1  ;;  %v1543_v4 = vrot.slane %v1541_v50, 2  ;;  %v1614_v18 = vrot.slane %v1559_v8, 3  ;;  %v3354_v27 = vld [vmem:[#allocation12 + $0x140] ss:$8 sps:$4 sm:$0xff]  }
 0x358   : > { %v1482_v0 = vrot.slane %v1480_v34, 1  ;;  %2207 = vmatprep.subr.bf16.mxu0 %v3353_v11  ;;  %v1604_v6 = vrot.slane %v1560_v33, 3  ;;  %v1536_v34 = vsel %vm1503_vm5, %v1532_v40, %v1535_v14  ;;  %v1501_v53 = vrot.slane %v1434_v63, 1  ;;  %v1432_v39 = vld [vmem:[#allocation2 + $0x28] sm:$0x7] }
 0x359   : > { %v1544_v60 = vor.u32 %v1543_v4, %v1540_v9  ;;  %v1600_v5 = vrot.slane %v1536_v34, 3  ;;  %v1500_v9 = vsel %vm723_vm3, %v1498_v3, %v1499_v31  ;;  %v3374_v22 = vld [vmem:[#allocation12 + $0x1a4] ss:$8 sps:$4 sm:$0xff]  }
 0x35a   : > { %v1483_v28 = vsel %vm670_vm1, %v1478_v41, %v1482_v0  ;;  %v1486_v1 = vor.u32 %v1484_v51, %v1482_v0  ;;  %v1605_v24 = vsel %vm1565_vm4, %v1603_v7, %v1604_v6  ;;  %v4771_v0 = vmov 0  }
 0x35b   : > { %v1595_v16 = vrot.slane %v1483_v28, 3  ;;  %2327 = vmatmul.mubr.bf16.vlgmr.msra.gmra.mrb[24].mxu1 %v1605_v24  ;;  %2208 = vmatpush1.bf16.msra.mxu0 %v3351_v13  ;;  %v1552_v7 = vrot.slane %v4385_v21, 2  ;;  %v1554_v51 = vrot.slane %v4403_v46, 2  ;;  %v1545_v8 = vsel %vm1503_vm5, %v1535_v14, %v1544_v60  ;;  %v3357_v21 = vld [vmem:[#allocation12 + $0x150] ss:$8 sps:$4 sm:$0xff]  }
 0x35c   : > { %v1608_v11 = vrot.slane %v1486_v1, 3  ;;  %2209 = vmatprep.subr.bf16.mxu0 %v3356_v23  ;;  %2336 = vmatprep.mubr.bf16.mxu1 %v4771_v0  ;;  %v1612_v41 = vrot.slane %v1544_v60, 3  ;;  %v1601_v13 = vrot.slane %v1545_v8, 3  ;;  %v1502_v23 = vsel %vm723_vm3, %v1499_v31, %v1501_v53  ;;  %v3362_v1 = vld [vmem:[#allocation12 + $0x164] ss:$8 sps:$4 sm:$0xff]  }
 0x35d   : > { %v1596_v20 = vsel %vm1565_vm4, %v1594_v15, %v1595_v16  ;;  %v1597_v33 = vrot.slane %v1500_v9, 3  ;;  %v1610_v50 = vrot.slane %v1501_v53, 3  ;;  %v1598_v63 = vrot.slane %v1502_v23, 3  ;;  %v3368_v53 = vld [vmem:[#allocation12 + $0x184] ss:$8 sps:$4 sm:$0xff]  }
 0x35e   : > { %2180 = vmatprep.mubr.bf16.mxu0 %v1596_v20  ;;  %v1609_v40 = vsel %vm1565_vm4, %v1595_v16, %v1608_v11  ;;  %v4772_v46 = vrot.slane %v4445_v45, 2  ;;  %v1555_v14 = vsel %vm1550_vm6, %v1552_v7, %v1554_v51  ;;  %v1589_v28 = vrot.slane %v1554_v51, 3  ;;  %v3360_v20 = vld [vmem:[#allocation12 + $0x160] ss:$8 sps:$4 sm:$0xff]   ;;  %v3371_v51 = vld [vmem:[#allocation12 + $0x194] ss:$8 sps:$4 sm:$0xff]  }
 0x35f   : > { %2181 = vmatmul.mubr.bf16.gmra.mrb[8].mxu0 %v1593_v19  ;;  %v4487_v19 = vsel %vm1565_vm4, %v1600_v5, %v1601_v13  ;;  %v4490_v4 = vsel %vm1565_vm4, %v1601_v13, %v1612_v41  ;;  %v1579_v24 = vrot.slane %v1555_v14, 3  ;;  %v1606_v16 = vrot.slane %v1432_v39, 3  ;;  %v3377_v8 = vld [vmem:[#allocation12 + $0x1b4] ss:$8 sps:$4 sm:$0xff]   ;;  %v3380_v9 = vld [vmem:[#allocation12 + $0x1c4] ss:$8 sps:$4 sm:$0xff]  }
 0x360   : > { %2210 = vmatpush1.bf16.msra.mxu0 %v3354_v27  ;;  %2190 = vmatprep.mubr.bf16.mxu0 %v1609_v40  ;;  %v1553_v15 = vsel %vm1550_vm6, %v4772_v46, %v1552_v7  ;;  %v4773_v45 = vor.u32 %v4422_v12, %v4420_v10  ;;  %v4498_v27 = vsel %vm1565_vm4, %v1597_v33, %v1598_v63  ;;  %v3365_v12 = vld [vmem:[#allocation12 + $0x174] ss:$8 sps:$4 sm:$0xff]   ;;  %v3366_v7 = vld [vmem:[#allocation12 + $0x180] ss:$8 sps:$4 sm:$0xff]   ;;  %v3369_v40 = vld [vmem:[#allocation12 + $0x190] ss:$8 sps:$4 sm:$0xff]  }
 0x361   : > { %2211 = vmatprep.subr.bf16.mxu0 %v3359_v25  ;;  %v1578_v3 = vrot.slane %v1553_v15, 3  ;;  %v4501_v11 = vsel %vm1565_vm4, %v1598_v63, %v1610_v50  ;;  %v1615_v60 = vsel %vm1565_vm4, %v1604_v6, %v1614_v18  ;;  %v4508_v31 = vsel %vm1565_vm4, %v1579_v24, %v1589_v28  ;;  %v3363_v18 = vld [vmem:[#allocation12 + $0x170] ss:$8 sps:$4 sm:$0xff]   ;;  %v3378_v41 = vld [vmem:[#allocation12 + $0x1c0] ss:$8 sps:$4 sm:$0xff]  }
 0x362   : > { %v1515_v34 = vsel %vm1503_vm5, %v4773_v45, %v4425_v17  ;;  %v1607_v17 = vsel %vm1565_vm4, %v1592_v54, %v1606_v16  ;;  %v4774_v25 = vrot.slane %v4441_v35, 3  ;;  %v3372_v54 = vld [vmem:[#allocation12 + $0x1a0] ss:$8 sps:$4 sm:$0xff]   ;;  %v3375_v35 = vld [vmem:[#allocation12 + $0x1b0] ss:$8 sps:$4 sm:$0xff]  }
 0x363   : > { %v4505_v5 = vsel %vm1565_vm4, %v1578_v3, %v1579_v24  ;;  %2337 = vmatmul.mubr.bf16.gmra.mrb[28].mxu1 %v1615_v60  ;;  %v1575_v10 = vrot.slane %v1515_v34, 3  ;;  %v3383_v39 = vld [vmem:[#allocation12 + $0x1d4] ss:$8 sps:$4 sm:$0xff]   ;;  %v3381_v13 = vld [vmem:[#allocation12 + $0x1d0] ss:$8 sps:$4 sm:$0xff]  }
 0x364   : > { %2212 = vmatpush1.bf16.msra.mxu0 %v3357_v21  ;;  %v3386_v23 = vld [vmem:[#allocation12 + $0x1e4] ss:$8 sps:$4 sm:$0xff]   ;;  %v3384_v33 = vld [vmem:[#allocation12 + $0x1e0] ss:$8 sps:$4 sm:$0xff]   ;;  %v3389_v50 = vld [vmem:[#allocation12 + $0x1f4] ss:$8 sps:$4 sm:$0xff]  }
 0x365   : > { %2213 = vmatprep.subr.bf16.mxu0 %v3362_v1  ;;  %v1577_v6 = vsel %vm1565_vm4, %v1575_v10, %v4774_v25  ;;  %v3387_v21 = vld [vmem:[#allocation12 + $0x1f0] ss:$8 sps:$4 sm:$0xff]  }
 0x367   : > { %2191 = vmatmul.mubr.bf16.gmra.mrb[12].mxu0 %v1607_v17 }
 0x368   : > { %2214 = vmatpush1.bf16.msra.mxu0 %v3360_v20  ;;  %2233 = vmatprep.mubr.bf16.mxu0 %v1577_v6 }
 0x369   : > { %2215 = vmatprep.subr.bf16.mxu0 %v3365_v12 }
 0x36c   : > { %2216 = vmatpush1.bf16.msra.mxu0 %v3363_v18 }
 0x36d   : > { %2217 = vmatprep.subr.bf16.mxu0 %v3368_v53 }
 0x370   : > { %2218 = vmatpush1.bf16.msra.mxu0 %v3366_v7 }
 0x371   : > { %2219 = vmatprep.subr.bf16.mxu0 %v3371_v51 }
 0x374   : > { %2220 = vmatpush1.bf16.msra.mxu0 %v3369_v40 }
 0x375   : > { %2221 = vmatprep.subr.bf16.mxu0 %v3374_v22 }
 0x378   : > { %2222 = vmatpush1.bf16.msra.mxu0 %v3372_v54 }
 0x379   : > { %2223 = vmatprep.subr.bf16.mxu0 %v3377_v8 }
 0x37c   : > { %2224 = vmatpush1.bf16.msra.mxu0 %v3375_v35 }
 0x37d   : > { %2225 = vmatprep.subr.bf16.mxu0 %v3380_v9 }
 0x380   : > { %2226 = vmatpush1.bf16.msra.mxu0 %v3378_v41 }
 0x381   : > { %2227 = vmatprep.subr.bf16.mxu0 %v3383_v39 }
 0x384   : > { %2228 = vmatpush1.bf16.msra.mxu0 %v3381_v13 }
 0x385   : > { %2229 = vmatprep.subr.bf16.mxu0 %v3386_v23 }
 0x388   : > { %2230 = vmatpush1.bf16.msra.mxu0 %v3384_v33 }
 0x389   : > { %2231 = vmatprep.subr.bf16.mxu0 %v3389_v50 }
 0x38c   : > { %2232 = vmatpush1.bf16.msra.mxu0 %v3387_v21 }
 0x38d   : > { %2274 = vmatprep.subr.bf16.mxu0 %v4291_v30 }
 0x38f   : > { %2234 = vmatmul.mubr.bf16.vlgmr.msra.gmra.mrb[0].mxu0 %v4428_v57 }
 0x390   : > { %2243 = vmatprep.mubr.bf16.mxu0 %v4455_v44  ;;  %2275 = vmatpush1.bf16.msra.mxu0 %v4289_v29 }
 0x391   : > { %2276 = vmatprep.subr.bf16.mxu0 %v4293_v32 }
 0x394   : > { %2277 = vmatpush1.bf16.msra.mxu0 %v4297_v37 }
 0x395   : > { %2278 = vmatprep.subr.bf16.mxu0 %v4300_v38 }
 0x397   : > { %2244 = vmatmul.mubr.bf16.gmra.mrb[4].mxu0 %v4449_v36 }
 0x398   : > { %2253 = vmatprep.mubr.bf16.mxu0 %v4487_v19  ;;  %2279 = vmatpush1.bf16.msra.mxu0 %v4303_v42 }
 0x399   : > { %2280 = vmatprep.subr.bf16.mxu0 %v4306_v43 }
 0x39c   : > { %2281 = vmatpush1.bf16.msra.mxu0 %v4309_v47 }
 0x39d   : > { %2282 = vmatprep.subr.bf16.mxu0 %v4312_v48  ;;  %v1716_v48 = vld [vmem:[#allocation14] sm:$0x3] }
 0x39f   : > { %2254 = vmatmul.mubr.bf16.gmra.mrb[8].mxu0 %v4498_v27 }
 0x3a0   : > { %2263 = vmatprep.mubr.bf16.mxu0 %v4490_v4  ;;  %2283 = vmatpush1.bf16.msra.mxu0 %v4315_v49  ;;  %v4775_v49 = vsub.s32 0, %v4337_v2 }
 0x3a1   : > { %2284 = vmatprep.subr.bf16.mxu0 %v4318_v52 }
 0x3a2   : > { %v4545_v52 = vrot.slane %v1716_v48, %v4775_v49 }
 0x3a4   : > { %2285 = vmatpush1.bf16.msra.mxu0 %v4321_v55  ;;  %v4776_v55 = vsub.s32 1, %v4337_v2 }
 0x3a5   : > { %2286 = vmatprep.subr.bf16.mxu0 %v4324_v56 }
 0x3a6   : > { %v1725_v56 = vrot.slane %v1716_v48, %v4776_v55 }
 0x3a7   : > { %2264 = vmatmul.mubr.bf16.gmra.mrb[12].mxu0 %v4501_v11 }
 0x3a8   : > { %2287 = vmatpush1.bf16.msra.mxu0 %v4327_v58  ;;  %2306 = vmatprep.mubr.bf16.mxu0 %v4771_v0 }
 0x3a9   : > { %2288 = vmatprep.subr.bf16.mxu0 %v4330_v59 }
 0x3ac   : > { %2289 = vmatpush1.bf16.msra.mxu0 %v4333_v61 }
 0x3af   : > { %2307 = vmatmul.mubr.bf16.vlgmr.msra.gmra.mrb[0].mxu0 %v4505_v5 }
 0x3b0   : > { %2316 = vmatprep.mubr.bf16.mxu0 %v4771_v0 }
 0x3b7   : > { %2317 = vmatmul.mubr.bf16.gmra.mrb[4].mxu0 %v4508_v31 }
 0x42e   : > { %v2328_v29 = vpop.f32.mrb[24].mxu1 }
 0x42f   : > { %v2330_v30 = vpop.f32.mrb[25].mxu1 }
 0x430   : > { %v2332_v32 = vpop.f32.mrb[26].mxu1 }
 0x431   : > { %v2334_v37 = vpop.f32.mrb[27].mxu1 }
 0x436   : > { %v2338_v38 = vpop.f32.mrb[28].mxu1 }
 0x437   : > { %v2340_v42 = vpop.f32.mrb[29].mxu1 }
 0x438   : > { %v2342_v43 = vpop.f32.mrb[30].mxu1 }
 0x439   : > { %v2344_v47 = vpop.f32.mrb[31].mxu1 }
 0x472   : > { %v2255_v58 = vpop.f32.mrb[8].mxu0 }
 0x473   : > { %v2996_v59 = vadd.f32 %v2255_v58, %v4545_v52  ;;  %v2257_v61 = vpop.f32.mrb[9].mxu0 }
 0x474   : > { %v2998_v57 = vadd.f32 %v2257_v61, %v1725_v56  ;;  %v2259_v36 = vpop.f32.mrb[10].mxu0 }
 0x475   : > { %v2997_v44 = vadd.f32 %v2996_v59, %v2328_v29  ;;  %v3000_v0 = vadd.f32 %v2259_v36, %v4545_v52  ;;  %v2261_v63 = vpop.f32.mrb[11].mxu0  ;;  %v2408_v59 = vmul.f32 0.70710677, %v4392_v26 }
 0x476   : > { %v2999_v46 = vadd.f32 %v2998_v57, %v2330_v30  ;;  %v3002_v15 = vadd.f32 %v2261_v63, %v1725_v56 }
 0x477   : > { %v3001_v14 = vadd.f32 %v3000_v0, %v2332_v32  ;;  %v4777_v0 = vld [vmem:[#allocation29_spill] sm:$0xff] }
 0x478   : > { %v2904_v28 = vmul.f32 -1.442695, %v2999_v46  ;;  %v3003_v1 = vadd.f32 %v3002_v15, %v2334_v37  ;;  %v2409_v63 = vmul.f32 0.70710677, %v4777_v0 }
 0x47a   : > { %3422 = vpow2.f32 %v2904_v28  ;;  %v2905_v19 = vmul.f32 -1.442695, %v3003_v1  ;;  %v2265_v4 = vpop.f32.mrb[12].mxu0 }
 0x47b   : > { %v3004_v2 = vadd.f32 %v2265_v4, %v4545_v52  ;;  %v2267_v3 = vpop.f32.mrb[13].mxu0 }
 0x47c   : > { %3424 = vpow2.f32 %v2905_v19  ;;  %v3006_v24 = vadd.f32 %v2267_v3, %v1725_v56  ;;  %v2269_v16 = vpop.f32.mrb[14].mxu0  ;;  %v4778_v19 = vld [vmem:[#allocation30_spill] sm:$0xff] }
 0x47d   : > { %v4552_v45 = vadd.f32 %v3004_v2, %v2338_v38  ;;  %v3008_v34 = vadd.f32 %v2269_v16, %v4545_v52  ;;  %v2271_v27 = vpop.f32.mrb[15].mxu0  ;;  %v2410_v4 = vmul.f32 0.70710677, %v4778_v19 }
 0x47e   : > { %v3007_v11 = vadd.f32 %v3006_v24, %v2340_v42  ;;  %v3010_v60 = vadd.f32 %v2271_v27, %v1725_v56  ;;  %v4779_v27 = vld [vmem:[#allocation25_spill] sm:$0xff] }
 0x47f   : > { %v4555_v5 = vadd.f32 %v3008_v34, %v2342_v43  ;;  %v2407_v43 = vmul.f32 0.70710677, %v4387_v62 }
 0x480   : > { %v2906_v31 = vmul.f32 -1.442695, %v3007_v11  ;;  %v3011_v20 = vadd.f32 %v3010_v60, %v2344_v47  ;;  %v2403_v11 = vmul.f32 0.70710677, %v4779_v27 }
 0x482   : > { %3426 = vpow2.f32 %v2906_v31  ;;  %v2907_v10 = vmul.f32 -1.442695, %v3011_v20  ;;  %v4557_v12 = vpop.f32.mrb[0].mxu0  ;;  %v4780_v20 = vld [vmem:[#allocation26_spill] sm:$0xff] }
 0x483   : > { %v2310_v17 = vpop.f32.mrb[1].mxu0  ;;  %v2988_v3 = vadd.f32 %v4557_v12, %v4545_v52 }
 0x484   : > { %v3423_v25 = vpop.eup %3422  ;;  %3428 = vpow2.f32 %v2907_v10  ;;  %v2989_v6 = vadd.f32 %v2310_v17, %v1725_v56  ;;  %v4559_v18 = vpop.f32.mrb[2].mxu0  ;;  %v2404_v10 = vmul.f32 0.70710677, %v4780_v20 }
 0x485   : > { %v2375_v53 = vadd.f32 1.0, %v3423_v25  ;;  %v2314_v7 = vpop.f32.mrb[3].mxu0 }
 0x486   : > { %v3425_v51 = vpop.eup %3424  ;;  %v2900_v40 = vmul.f32 -1.442695, %v2989_v6  ;;  %v2991_v22 = vadd.f32 %v2314_v7, %v1725_v56  ;;  %v4781_v7 = vld [vmem:[#allocation27_spill] sm:$0xff] }
 0x487   : > { %3430 = vrcp.f32 %v2375_v53  ;;  %v2376_v54 = vadd.f32 1.0, %v3425_v51  ;;  %v2405_v51 = vmul.f32 0.70710677, %v4781_v7 }
 0x488   : > { %3432 = vpow2.f32 %v2900_v40  ;;  %v2901_v8 = vmul.f32 -1.442695, %v2991_v22 }
 0x489   : > { %3434 = vrcp.f32 %v2376_v54 }
 0x48a   : > { %3436 = vpow2.f32 %v2901_v8  ;;  %v4561_v35 = vpop.f32.mrb[4].mxu0 }
 0x48b   : > { %v2320_v9 = vpop.f32.mrb[5].mxu0  ;;  %v2992_v17 = vadd.f32 %v4561_v35, %v4545_v52  ;;  %v4782_v35 = vld [vmem:[#allocation28_spill] sm:$0xff] }
 0x48c   : > { %v3427_v41 = vpop.eup %3426  ;;  %v2993_v39 = vadd.f32 %v2320_v9, %v1725_v56  ;;  %v2322_v13 = vpop.f32.mrb[6].mxu0  ;;  %v2406_v9 = vmul.f32 0.70710677, %v4782_v35 }
 0x48d   : > { %v2377_v23 = vadd.f32 1.0, %v3427_v41  ;;  %v2324_v33 = vpop.f32.mrb[7].mxu0 }
 0x48e   : > { %v3429_v50 = vpop.eup %3428  ;;  %v2902_v21 = vmul.f32 -1.442695, %v2993_v39  ;;  %v2995_v29 = vadd.f32 %v2324_v33, %v1725_v56 }
 0x48f   : > { %3438 = vrcp.f32 %v2377_v23  ;;  %v2378_v30 = vadd.f32 1.0, %v3429_v50 }
 0x490   : > { %3440 = vpow2.f32 %v2902_v21  ;;  %v2903_v32 = vmul.f32 -1.442695, %v2995_v29 }
 0x491   : > { %v3431_v37 = vpop.eup %3430  ;;  %3442 = vrcp.f32 %v2378_v30 }
 0x492   : > { %v3433_v38 = vpop.eup %3432  ;;  %3444 = vpow2.f32 %v2903_v32  ;;  %v2399_v42 = vmul.f32 %v3431_v37, %v2997_v44 }
 0x493   : > { %v3435_v47 = vpop.eup %3434  ;;  %v2371_v48 = vadd.f32 1.0, %v3433_v38 }
 0x494   : > { %v3437_v49 = vpop.eup %3436  ;;  %v4564_v55 = vadd.f32 %v2407_v43, %v2399_v42  ;;  %v2400_v58 = vmul.f32 %v3435_v47, %v3001_v14 }
 0x495   : > { %3446 = vrcp.f32 %v2371_v48  ;;  %v2372_v56 = vadd.f32 1.0, %v3437_v49 }
 0x496   : > { %2427 = vadd.xlane.f32.xlu0 %v4564_v55  ;;  %v4568_v61 = vadd.f32 %v2408_v59, %v2400_v58  ;;  %v2447_v62 = vmul.f32 %v4564_v55, %v4564_v55 }
 0x497   : > { %3448 = vrcp.f32 %v2372_v56 }
 0x498   : > { %2429 = vadd.xlane.f32.xlu1 %v4568_v61  ;;  %v2448_v44 = vmul.f32 %v4568_v61, %v4568_v61 }
 0x499   : > { %v3439_v57 = vpop.eup %3438 }
 0x49a   : > { %v3441_v36 = vpop.eup %3440  ;;  %2459 = vadd.xlane.f32.xlu0 %v2447_v62  ;;  %v2401_v26 = vmul.f32 %v3439_v57, %v4552_v45  ;;  %v2990_v45 = vadd.f32 %v4559_v18, %v4545_v52  ;;  %v2994_v18 = vadd.f32 %v2322_v13, %v4545_v52 }
 0x49b   : > { %v3443_v46 = vpop.eup %3442  ;;  %v2373_v15 = vadd.f32 1.0, %v3441_v36 }
 0x49c   : > { %v3445_v14 = vpop.eup %3444  ;;  %2461 = vadd.xlane.f32.xlu1 %v2448_v44  ;;  %v4577_v28 = vadd.f32 %v2409_v63, %v2401_v26  ;;  %v2402_v1 = vmul.f32 %v3443_v46, %v4555_v5  ;;  %v4623_v46 = vld [vmem:[#allocation15] ss:$0 sm:$0xff] }
 0x49d   : > { %3450 = vrcp.f32 %v2373_v15  ;;  %v2374_v2 = vadd.f32 1.0, %v3445_v14 }
 0x49e   : > { %2431 = vadd.xlane.f32.xlu0 %v4577_v28  ;;  %v4584_v24 = vadd.f32 %v2410_v4, %v2402_v1  ;;  %v2449_v13 = vmul.f32 %v4577_v28, %v4577_v28 }
 0x49f   : > { %v3447_v16 = vpop.eup %3446  ;;  %3452 = vrcp.f32 %v2374_v2 }
 0x4a0   : > { %2433 = vadd.xlane.f32.xlu1 %v4584_v24  ;;  %v2395_v34 = vmul.f32 %v3447_v16, %v2988_v3  ;;  %v2450_v23 = vmul.f32 %v4584_v24, %v4584_v24  ;;  %v4627_v16 = vld [vmem:[#allocation17] ss:$0 sm:$0xff] }
 0x4a1   : > { %v3449_v60 = vpop.eup %3448 }
 0x4a2   : > { %v4590_v5 = vadd.f32 %v2403_v11, %v2395_v34  ;;  %v2396_v31 = vmul.f32 %v3449_v60, %v2990_v45 }
 0x4a4   : > { %2419 = vadd.xlane.f32.xlu0 %v4590_v5  ;;  %v4594_v12 = vadd.f32 %v2404_v10, %v2396_v31  ;;  %v2443_v54 = vmul.f32 %v4590_v5, %v4590_v5 }
 0x4a6   : > { %v2444_v25 = vmul.f32 %v4594_v12, %v4594_v12 }
 0x4a7   : > { %v3451_v6 = vpop.eup %3450 }
 0x4a8   : > { %2453 = vadd.xlane.f32.xlu1 %v2444_v25  ;;  %2421 = vadd.xlane.f32.xlu0 %v4594_v12  ;;  %v2397_v53 = vmul.f32 %v3451_v6, %v2992_v17 }
 0x4a9   : > { %v3453_v40 = vpop.eup %3452 }
 0x4aa   : > { %v4603_v22 = vadd.f32 %v2405_v51, %v2397_v53  ;;  %v2398_v8 = vmul.f32 %v3453_v40, %v2994_v18 }
 0x4ac   : > { %2423 = vadd.xlane.f32.xlu1 %v4603_v22  ;;  %2451 = vadd.xlane.f32.xlu0 %v2443_v54  ;;  %v4609_v41 = vadd.f32 %v2406_v9, %v2398_v8  ;;  %v2445_v52 = vmul.f32 %v4603_v22, %v4603_v22 }
 0x4ae   : > { %v2446_v39 = vmul.f32 %v4609_v41, %v4609_v41 }
 0x4b0   : > { %2425 = vadd.xlane.f32.xlu1 %v4609_v41  ;;  %2455 = vadd.xlane.f32.xlu0 %v2445_v52 }
 0x4b4   : > { %2457 = vadd.xlane.f32.xlu1 %v2446_v39  ;;  %2463 = vadd.xlane.f32.xlu0 %v2449_v13 }
 0x4b8   : > { %2465 = vadd.xlane.f32.xlu1 %v2450_v23 }
 0x523   : > { %v2428_v33 = vpop.xlane.xlu0 %2427 }
 0x524   : > { %v2439_v50 = vmul.f32 0.03125, %v2428_v33 }
 0x525   : > { %v2430_v21 = vpop.xlane.xlu1 %2429 }
 0x526   : > { %v2440_v29 = vmul.f32 0.03125, %v2430_v21  ;;  %v2479_v32 = vmul.f32 %v2439_v50, %v2439_v50  ;;  %v2495_v0 = vsub.f32 %v4564_v55, %v2439_v50 }
 0x527   : > { %v2460_v30 = vpop.xlane.xlu0 %2459 }
 0x528   : > { %v2471_v37 = vmul.f32 0.03125, %v2460_v30  ;;  %v2480_v42 = vmul.f32 %v2440_v29, %v2440_v29  ;;  %v2496_v1 = vsub.f32 %v4568_v61, %v2440_v29 }
 0x529   : > { %v2462_v38 = vpop.xlane.xlu1 %2461 }
 0x52a   : > { %v2487_v43 = vsub.f32 %v2471_v37, %v2479_v32  ;;  %v2472_v47 = vmul.f32 0.03125, %v2462_v38 }
 0x52b   : > { %v2432_v58 = vpop.xlane.xlu0 %2431 }
 0x52c   : > { %v2503_v48 = vadd.f32 1e-05, %v2487_v43  ;;  %v2488_v49 = vsub.f32 %v2472_v47, %v2480_v42  ;;  %v2441_v17 = vmul.f32 0.03125, %v2432_v58 }
 0x52d   : > { %v2434_v56 = vpop.xlane.xlu1 %2433 }
 0x52e   : > { %3454 = vrsqrt.f32 %v2503_v48  ;;  %v2504_v59 = vadd.f32 1e-05, %v2488_v49  ;;  %v2481_v8 = vmul.f32 %v2441_v17, %v2441_v17  ;;  %v2442_v35 = vmul.f32 0.03125, %v2434_v56 }
 0x530   : > { %3456 = vrsqrt.f32 %v2504_v59  ;;  %v2482_v30 = vmul.f32 %v2442_v35, %v2442_v35 }
 0x531   : > { %v2420_v62 = vpop.xlane.xlu0 %2419 }
 0x532   : > { %v4620_v44 = vmul.f32 0.03125, %v2420_v62 }
 0x534   : > { %v2475_v45 = vmul.f32 %v4620_v44, %v4620_v44  ;;  %v2491_v48 = vsub.f32 %v4590_v5, %v4620_v44 }
 0x535   : > { %v2454_v57 = vpop.xlane.xlu1 %2453  ;;  %v2422_v36 = vpop.xlane.xlu0 %2421 }
 0x536   : > { %v2436_v26 = vmul.f32 0.03125, %v2422_v36  ;;  %v2468_v15 = vmul.f32 0.03125, %v2454_v57 }
 0x538   : > { %v3455_v63 = vpop.eup %3454  ;;  %v2476_v14 = vmul.f32 %v2436_v26, %v2436_v26  ;;  %v2492_v42 = vsub.f32 %v4594_v12, %v2436_v26 }
 0x539   : > { %v2519_v19 = vmul.f32 %v3455_v63, %v2495_v0  ;;  %v2424_v4 = vpop.xlane.xlu1 %2423  ;;  %v2452_v2 = vpop.xlane.xlu0 %2451 }
 0x53a   : > { %v3457_v3 = vpop.eup %3456  ;;  %v2484_v34 = vsub.f32 %v2468_v15, %v2476_v14  ;;  %v2437_v27 = vmul.f32 0.03125, %v2424_v4  ;;  %v2467_v55 = vmul.f32 0.03125, %v2452_v2  ;;  %v2497_v14 = vsub.f32 %v4577_v28, %v2441_v17 }
 0x53b   : > { %v2534_v11 = vmul.f32 %v4623_v46, %v2519_v19  ;;  %v2520_v60 = vmul.f32 %v3457_v3, %v2496_v1  ;;  %v2498_v2 = vsub.f32 %v4584_v24, %v2442_v35 }
 0x53c   : > { %v2500_v31 = vadd.f32 1e-05, %v2484_v34  ;;  %v2483_v20 = vsub.f32 %v2467_v55, %v2475_v45  ;;  %v2477_v25 = vmul.f32 %v2437_v27, %v2437_v27  ;;  %v2493_v12 = vsub.f32 %v4603_v22, %v2437_v27 }
 0x53d   : > { %v2549_v61 = vadd.f32 %v4627_v16, %v2534_v11  ;;  %v2535_v10 = vmul.f32 %v4623_v46, %v2520_v60  ;;  %v2426_v6 = vpop.xlane.xlu1 %2425  ;;  %v2456_v18 = vpop.xlane.xlu0 %2455 }
 0x53e   : > { %3458 = vrsqrt.f32 %v2500_v31  ;;  %v2499_v53 = vadd.f32 1e-05, %v2483_v20  ;;  %v2438_v7 = vmul.f32 0.03125, %v2426_v6  ;;  %v2469_v51 = vmul.f32 0.03125, %v2456_v18 }
 0x53f   : > { %2557 = vst [vmem:[%s4634_s28 + $0x20] sm:$0xff] %v2549_v61  ;;  %v2550_v40 = vadd.f32 %v4627_v16, %v2535_v10 }
 0x540   : > { %3460 = vrsqrt.f32 %v2499_v53  ;;  %v2485_v54 = vsub.f32 %v2469_v51, %v2477_v25  ;;  %v2478_v39 = vmul.f32 %v2438_v7, %v2438_v7  ;;  %v2494_v44 = vsub.f32 %v4609_v41, %v2438_v7 }
 0x541   : > { %2558 = vst [vmem:[%s4634_s28 + $0x28] sm:$0xff] %v2550_v40  ;;  %v2458_v9 = vpop.xlane.xlu1 %2457  ;;  %v2464_v52 = vpop.xlane.xlu0 %2463 }
 0x542   : > { %v2501_v13 = vadd.f32 1e-05, %v2485_v54  ;;  %v2470_v23 = vmul.f32 0.03125, %v2458_v9  ;;  %v2473_v33 = vmul.f32 0.03125, %v2464_v52 }
 0x544   : > { %3462 = vrsqrt.f32 %v2501_v13  ;;  %v2486_v50 = vsub.f32 %v2470_v23, %v2478_v39  ;;  %v2489_v21 = vsub.f32 %v2473_v33, %v2481_v8 }
 0x545   : > { %v2466_v29 = vpop.xlane.xlu1 %2465 }
 0x546   : > { %v2502_v32 = vadd.f32 1e-05, %v2486_v50  ;;  %v2505_v37 = vadd.f32 1e-05, %v2489_v21  ;;  %v2474_v38 = vmul.f32 0.03125, %v2466_v29 }
 0x548   : > { %v3459_v43 = vpop.eup %3458  ;;  %3464 = vrsqrt.f32 %v2502_v32  ;;  %v2490_v47 = vsub.f32 %v2474_v38, %v2482_v30 }
 0x549   : > { %v2516_v49 = vmul.f32 %v3459_v43, %v2492_v42  ;;  %3466 = vrsqrt.f32 %v2505_v37 }
 0x54a   : > { %v3461_v58 = vpop.eup %3460  ;;  %v2506_v59 = vadd.f32 1e-05, %v2490_v47 }
 0x54b   : > { %v2531_v56 = vmul.f32 %v4623_v46, %v2516_v49  ;;  %v2515_v62 = vmul.f32 %v3461_v58, %v2491_v48 }
 0x54c   : > { %3468 = vrsqrt.f32 %v2506_v59 }
 0x54d   : > { %v2546_v57 = vadd.f32 %v4627_v16, %v2531_v56  ;;  %v2530_v36 = vmul.f32 %v4623_v46, %v2515_v62 }
 0x54e   : > { %v3463_v26 = vpop.eup %3462 }
 0x54f   : > { %2554 = vst [vmem:[%s4634_s28 + $0x8] sm:$0xff] %v2546_v57  ;;  %v2545_v0 = vadd.f32 %v4627_v16, %v2530_v36  ;;  %v2517_v5 = vmul.f32 %v3463_v26, %v2493_v12 }
 0x551   : > { %2553 = vst [vmem:[%s4634_s28] sm:$0xff] %v2545_v0  ;;  %v2532_v63 = vmul.f32 %v4623_v46, %v2517_v5 }
 0x552   : > { %v3465_v15 = vpop.eup %3464 }
 0x553   : > { %v3467_v22 = vpop.eup %3466  ;;  %v2547_v1 = vadd.f32 %v4627_v16, %v2532_v63  ;;  %v2518_v19 = vmul.f32 %v3465_v15, %v2494_v44 }
 0x554   : > { %v2521_v4 = vmul.f32 %v3467_v22, %v2497_v14 }
 0x555   : > { %2555 = vst [vmem:[%s4634_s28 + $0x10] sm:$0xff] %v2547_v1  ;;  %v2533_v41 = vmul.f32 %v4623_v46, %v2518_v19 }
 0x556   : > { %v3469_v3 = vpop.eup %3468  ;;  %v2536_v45 = vmul.f32 %v4623_v46, %v2521_v4 }
 0x557   : > { %v2548_v34 = vadd.f32 %v4627_v16, %v2533_v41  ;;  %v2522_v28 = vmul.f32 %v3469_v3, %v2498_v2 }
 0x558   : > { %v2551_v27 = vadd.f32 %v4627_v16, %v2536_v45 }
 0x559   : > { %2556 = vst [vmem:[%s4634_s28 + $0x18] sm:$0xff] %v2548_v34  ;;  %v2537_v55 = vmul.f32 %v4623_v46, %v2522_v28 }
 0x55a   : > { %2559 = vst [vmem:[%s4634_s28 + $0x30] sm:$0xff] %v2551_v27 }
 0x55b   : > { %v2552_v24 = vadd.f32 %v4627_v16, %v2537_v55 }
 0x55d   : > { %2560 = vst [vmem:[%s4634_s28 + $0x38] sm:$0xff] %v2552_v24 }
 0x55e   : > { %3737 = shalt.err (!%p3734_p9)
}
 0x55f   : > { %s3738_s29 = scalar_lea.hbm %s4667_s24, 1024  ;;  %s3742_s26 = scalar_lea.hbm %s4783_s9, 2048 }
 0x560   : > { %p3739_p4 = scmp.ne.s32.totalorder %s4667_s24, %s3738_s29  ;;  %p3743_p2 = scmp.lt.u32.totalorder %s4667_s24, %s4783_s9 }
 0x561   : > { %p3744_p6 = scmp.lt.u32.totalorder %s3742_s26, %s3738_s29  ;;  %p3746_p10 = scmp.lt.u32.totalorder %s3738_s29, %s4667_s24 }
 0x562   : > { %p3740_p3 = pnand %p3739_p4, %p4784_p1 }
 0x563   : > { %p3745_p5 = por %p3744_p6, %p3743_p2 }
 0x564   : > { %p3741_p0 = pneg %p3740_p3 }
 0x565   : > { %p3747_p11 = por %p3746_p10, %p3745_p5 }
 0x567   : > { %p3748_p12 = pnand %p3747_p11, %p3741_p0 }
 0x569   : > { %3751 = shalt.err (!%p3748_p12)
}
 0x56a   : > { %s3823_s14 = smov 128   ;;  %s3824_s25 = smov 8  }
 0x56b   : > { %3086 = dma.vmem_to_hbm [thread:$0]  (%p4784_p1), %s4669_s13, 1024, %s4667_s24, %s2562_s15, %s3823_s14, %s3823_s14, %s3824_s25  }
 0x56c PF: > { %s2591_s1 = sand.u32 1, %s3794_s30   ;;  %p4785_p13 = scmp.ne.s32.totalorder %s4752_s22, 0 }
 0x56d   : > { %p4786_p8 = scmp.ge.s32.totalorder %s3806_s12, 2  ;;  %s2592_s18 = scalar_lea.sflag [#allocation5], %s2591_s1 }
 0x56f   : > { %p3118_p7 = pnand %p4786_p8, %p4785_p13 }
 0x571   : > { %3789 = dma.done.wait (!%p3118_p7), %s2592_s18, 1024  }
 0x572   : > { %3791 = vsyncadd (!%p3118_p7), %s2592_s18, 4294966272  ;;  %p26_p9 = scmp.ge.s32.totalorder %s4086_s19, 4   ;;  %s4787_s30 = smov %s3798_s10 }
 0x573   : > { %s4788_s10 = smov %s3802_s11  ;;  %s4789_s11 = smov %s4097_s23 }
 0x574   : > { %s4790_s12 = smov %s4086_s19  ;;  %28 = sbr.rel (!%p26_p9) target bundleno = 12 (0xc), region = 133 }
 0x57b   :  { %2597 = vsyncpa [#allocation4], 1 }
 0x57c   :  { %2599 = vsyncpa [#allocation4 + $0x1], 1 }
 0x57d   :  { %2600 = vsyncpa [#allocation7], 1 }
 0x57e   :  { %2601 = vsyncpa [#allocation10], 1 }
 0x57f   :  { %2602 = vsyncpa [#allocation13], 1 }
 0x580   :  { %2603 = vsyncpa [#allocation16], 1 }
 0x581   :  { %2604 = vsyncpa [#allocation5], 1 }
 0x582   :  { %2606 = vsyncpa [#allocation5 + $0x1], 1 }

</bundles_post_ra>
